<compile_context>
chip_gen: v7x
topology: tpu7x:2x2x1
jax: 0.10.0
libtpu: 0.0.40
codegen_flags: <defaults>
</compile_context>

<pallas_src>
import jax
import jax.numpy as jnp
import numpy as np
from jax.experimental import pallas as pl
from jax.experimental.pallas import tpu as pltpu

B = 2                      # batch
SEQ = 128                  # sequence length == token_size - 1
TOKEN_SIZE = SEQ + 1       # nn.Linear(token_size - 1, 1)
D_MODEL = 64               # bart.config.d_model (synthetic, small)
D_PAD = 128                # contraction dim padded to a full 128-lane MXU tile
VOCAB = 256                # synthetic vocab size (already a multiple of 128)
OUT_W = 128                # lane-dense width for the tiny consist output slab
BT = B * SEQ
INS_START_ID = 3


# ---------------------------------------------------------------------------
# Fused kernel: embedding gather + synthetic backbone + consist_head +
#               masking/compaction + consist_logit + sigmoid.  Single grid step.
# ---------------------------------------------------------------------------
def _bart_mlp_kernel(ins_id_ref,        # SMEM scalar-prefetch, (1,) int32
                     ids_ref,           # (B, 1, SEQ)   int32 token ids (per row)
                     ids_col_ref,       # (BT, 1)       int32 token ids (flat column)
                     emb_ref,           # (VOCAB, D_PAD) bf16 padded embedding table
                     w_enc_ref,         # (D_PAD, D_PAD) bf16
                     b_enc_ref,         # (1, D_PAD)     f32
                     w_lm_ref,          # (D_PAD, VOCAB) bf16
                     w_head_ref,        # (1, D_PAD)     bf16  consist_head weight (row)
                     w_logit_ref,       # (1, SEQ)       f32   consist_logit weight (row)
                     b_logit_ref,       # (1,)           f32   in SMEM
                     logits_ref,        # out (BT, VOCAB)   f32
                     consist_ref):      # out (B, 1, OUT_W) f32
    T = SEQ

    # --- embedding gather fused as a one-hot matmul on the MXU (exact) ------
    vocab_iota = jax.lax.broadcasted_iota(jnp.int32, (BT, VOCAB), 1)
    onehot = (ids_col_ref[...] == vocab_iota).astype(jnp.bfloat16)        # (BT, V)
    x = jnp.dot(onehot, emb_ref[...],
                preferred_element_type=jnp.float32).astype(jnp.bfloat16)  # (BT, Dp)

    # --- synthetic backbone --------------------------------------------------
    # TODO(synk): pretrained BartForCausalLM transformer stack is not
    # reproducible in-script; replaced by tanh(x @ W_enc + b) standing in for
    # the last hidden state, with logits = h @ W_lm.  bf16 MXU, f32 accumulate.
    h = jnp.tanh(
        jnp.dot(x, w_enc_ref[...], preferred_element_type=jnp.float32)
        + b_enc_ref[...])                                                 # (BT, Dp) f32
    hb = h.astype(jnp.bfloat16)
    logits_ref[...] = jnp.dot(hb, w_lm_ref[...],
                              preferred_element_type=jnp.float32)         # (BT, V) f32

    # --- consist branch: shared constants hoisted out of the per-row loop ---
    pos1 = jax.lax.broadcasted_iota(jnp.int32, (1, T), 1)
    ri = jax.lax.broadcasted_iota(jnp.int32, (T, T), 0)
    ci = jax.lax.broadcasted_iota(jnp.int32, (T, T), 1)
    upper = (ri < ci).astype(jnp.bfloat16)         # strictly-upper 0/1, bf16 MXU operand
    wlog = w_logit_ref[...]                        # (1, T) f32, lane-dense
    whead = w_head_ref[...]                        # (1, Dp) bf16
    ins_id = ins_id_ref[0]
    b_logit = b_logit_ref[0]

    for b in range(B):
        # consist_head: Linear(d_model, 1, bias=False), tokens on the lane axis.
        hb_b = hb[b * T:(b + 1) * T, :]                                    # (T, Dp) bf16
        ch = jax.lax.dot_general(whead, hb_b, (((1,), (1,)), ((), ())),
                                 preferred_element_type=jnp.float32)      # (1, T) f32

        # zero everything before the first ins_start_id token of this row.
        # NOTE: if a row contains no ins_start_id, first == T and the whole row
        # is zeroed (consist == sigmoid(bias)); the PyTorch code would raise.
        ids_b = ids_ref[b]                                                 # (1, T)
        first = jnp.min(jnp.where(ids_b == ins_id, pos1, T))               # scalar
        masked = jnp.where(pos1 < first, 0.0, ch)                          # (1, T) f32

        # exclusive nonzero-prefix count = destination index after compaction
        # (bf16 0/1 operands are lossless; counts <= 127).
        nzb = (masked != 0.0).astype(jnp.bfloat16)                         # (1, T)
        dest = jnp.dot(nzb, upper,
                       preferred_element_type=jnp.float32).astype(jnp.int32)  # (1, T)

        # TODO(synk): torch `.half()` (fp16) cast emulated with bfloat16 rounding.
        masked_h = masked.astype(jnp.bfloat16)                             # (1, T)

        # compaction as a one-hot MXU matvec: sub[k] = sum_j masked[j]*[dest[j]==k]
        sel = (ri == dest).astype(jnp.bfloat16)                            # (T, T)
        sub = jax.lax.dot_general(masked_h, sel, (((1,), (1,)), ((), ())),
                                  preferred_element_type=jnp.float32)      # (1, T)

        # consist_logit (f32 weights) + sigmoid; single lane-dense reduce.
        logit = jnp.sum(wlog * sub) + b_logit
        consist_ref[b] = jnp.full((1, OUT_W), jax.nn.sigmoid(logit), jnp.float32)


# ---------------------------------------------------------------------------
# pallas_call wrapper (single launch, single grid step)
# ---------------------------------------------------------------------------
def _fused_forward(ins_id, ids3, ids_col, emb, w_enc, b_enc, w_lm,
                   w_head, w_logit, b_logit):
    grid_spec = pltpu.PrefetchScalarGridSpec(
        num_scalar_prefetch=1,
        grid=(1,),
        in_specs=[
            pl.BlockSpec((B, 1, SEQ), lambda i, ins: (0, 0, 0)),          # ids per row
            pl.BlockSpec((BT, 1), lambda i, ins: (0, 0)),                 # ids flat col
            pl.BlockSpec((VOCAB, D_PAD), lambda i, ins: (0, 0)),          # emb table
            pl.BlockSpec((D_PAD, D_PAD), lambda i, ins: (0, 0)),          # w_enc
            pl.BlockSpec((1, D_PAD), lambda i, ins: (0, 0)),              # b_enc
            pl.BlockSpec((D_PAD, VOCAB), lambda i, ins: (0, 0)),          # w_lm
            pl.BlockSpec((1, D_PAD), lambda i, ins: (0, 0)),              # w_head
            pl.BlockSpec((1, SEQ), lambda i, ins: (0, 0)),                # w_logit row
            pl.BlockSpec(memory_space=pltpu.MemorySpace.SMEM),            # b_logit
        ],
        out_specs=(
            pl.BlockSpec((BT, VOCAB), lambda i, ins: (0, 0)),             # logits
            pl.BlockSpec((B, 1, OUT_W), lambda i, ins: (0, 0, 0)),        # consist
        ),
    )

    return pl.pallas_call(
        _bart_mlp_kernel,
        out_shape=(jax.ShapeDtypeStruct((BT, VOCAB), jnp.float32),
                   jax.ShapeDtypeStruct((B, 1, OUT_W), jnp.float32)),
        grid_spec=grid_spec,
        compiler_params=pltpu.CompilerParams(
            dimension_semantics=("arbitrary",)),
    )(ins_id, ids3, ids_col, emb, w_enc, b_enc, w_lm, w_head, w_logit, b_logit)


def prepare_params(params):
    """One-time parameter preprocessing, hoisted out of the per-call forward:
    pad the contraction dim to a full 128-lane tile, cast MXU operands to bf16,
    lay w_logit out as a lane-dense row, and shape b_logit for SMEM."""
    D = params["emb"].shape[1]
    pad = D_PAD - D
    return {
        "emb": jnp.pad(params["emb"], ((0, 0), (0, pad))).astype(jnp.bfloat16),
        "w_enc": jnp.pad(params["w_enc"], ((0, pad), (0, pad))).astype(jnp.bfloat16),
        "b_enc": jnp.pad(params["b_enc"], ((0, 0), (0, pad))),
        "w_lm": jnp.pad(params["w_lm"], ((0, pad), (0, 0))).astype(jnp.bfloat16),
        "w_head": jnp.pad(params["w_head"].T, ((0, 0), (0, pad))).astype(jnp.bfloat16),
        "w_logit": params["w_logit"].T,                                   # (1, SEQ)
        "b_logit": params["b_logit"].reshape(1),                          # (1,)
    }


@jax.jit
def bart_mlp_forward(batch, ins_id, prep):
    Bq, Tq = batch.shape
    ids3 = batch.reshape(Bq, 1, Tq)
    ids_col = batch.reshape(Bq * Tq, 1)
    logits2d, consist_wide = _fused_forward(
        ins_id, ids3, ids_col, prep["emb"], prep["w_enc"], prep["b_enc"],
        prep["w_lm"], prep["w_head"], prep["w_logit"], prep["b_logit"])
    logits = logits2d.reshape(Bq, Tq, VOCAB)
    consist = consist_wide[:, 0, :1]                                      # (B, 1)
    return logits, consist


# ---------------------------------------------------------------------------
# Pure numpy/JAX reference for verification
# ---------------------------------------------------------------------------
def reference_forward(batch, ins_id, params):
    bnp = np.asarray(batch)
    emb = np.asarray(params["emb"])[bnp]                                  # (B,T,D)
    h = np.tanh(emb @ np.asarray(params["w_enc"]) + np.asarray(params["b_enc"]))
    logits = h @ np.asarray(params["w_lm"])
    ch = (h @ np.asarray(params["w_head"]))[..., 0]                       # (B,T)
    Bq, Tq = ch.shape
    sub = np.zeros((Bq, Tq), np.float32)
    for i in range(Bq):
        s = ch[i].copy()
        idx = np.nonzero(bnp[i] == ins_id)[0][0]
        s[:idx] = 0.0
        nzv = s[s != 0.0]
        sub[i, :nzv.size] = nzv
    sub = np.asarray(jnp.asarray(sub).astype(jnp.bfloat16).astype(jnp.float32))
    logit = sub @ np.asarray(params["w_logit"]) + np.asarray(params["b_logit"])
    consist = 1.0 / (1.0 + np.exp(-logit))
    return logits, consist


if __name__ == "__main__":
    key = jax.random.PRNGKey(0)
    k_emb, k_enc, k_benc, k_lm, k_head, k_logit, k_blog, k_tok = \
        jax.random.split(key, 8)

    params = {
        "emb": 0.02 * jax.random.normal(k_emb, (VOCAB, D_MODEL), jnp.float32),
        "w_enc": 0.05 * jax.random.normal(k_enc, (D_MODEL, D_MODEL), jnp.float32),
        "b_enc": 0.01 * jax.random.normal(k_benc, (1, D_MODEL), jnp.float32),
        "w_lm": 0.05 * jax.random.normal(k_lm, (D_MODEL, VOCAB), jnp.float32),
        "w_head": 0.1 * jax.random.normal(k_head, (D_MODEL, 1), jnp.float32),
        "w_logit": 0.1 * jax.random.normal(k_logit, (SEQ, 1), jnp.float32),
        "b_logit": 0.01 * jax.random.normal(k_blog, (1, 1), jnp.float32),
    }

    # token ids >= 5 so INS_START_ID (=3) only appears where we place it
    batch = jax.random.randint(k_tok, (B, SEQ), 5, VOCAB).astype(jnp.int32)
    batch = batch.at[0, 10].set(INS_START_ID).at[1, 37].set(INS_START_ID)
    ins_id = jnp.asarray([INS_START_ID], dtype=jnp.int32)

    prep = prepare_params(params)           # one-time, outside the jitted forward

    logits, consist = bart_mlp_forward(batch, ins_id, prep)
    logits = jax.block_until_ready(logits)
    consist = jax.block_until_ready(consist)

    logits_ref, consist_ref = reference_forward(batch, INS_START_ID, params)

    assert logits.shape == (B, SEQ, VOCAB)
    assert consist.shape == (B, 1)
    assert np.allclose(np.asarray(logits), logits_ref, atol=2e-2, rtol=2e-2)
    assert np.allclose(np.asarray(consist), consist_ref, atol=2e-2, rtol=2e-2)

    print("KERNEL_OK")
</pallas_src>

<mosaic_0001>
module attributes {stable_mosaic.version = 11 : i64} {
  func.func @_bart_mlp_kernel(%arg0: i32, %arg1: memref<1xi32, #tpu.memory_space<smem>>, %arg2: memref<2x1x128xi32, #tpu.memory_space<vmem>>, %arg3: memref<256x1xi32, #tpu.memory_space<vmem>>, %arg4: memref<256x128xbf16, #tpu.memory_space<vmem>>, %arg5: memref<128x128xbf16, #tpu.memory_space<vmem>>, %arg6: memref<1x128xf32, #tpu.memory_space<vmem>>, %arg7: memref<128x256xbf16, #tpu.memory_space<vmem>>, %arg8: memref<1x128xbf16, #tpu.memory_space<vmem>>, %arg9: memref<1x128xf32, #tpu.memory_space<vmem>>, %arg10: memref<1xf32, #tpu.memory_space<smem>>, %arg11: memref<256x256xf32, #tpu.memory_space<vmem>>, %arg12: memref<2x1x128xf32, #tpu.memory_space<vmem>>) attributes {dimension_semantics = [#tpu.dimension_semantics<arbitrary>], iteration_bounds = array<i64: 1>, scalar_prefetch = 1 : i64, scratch_operands = 0 : i64, tpu.core_type = #tpu.core_type<tc>, window_params = [{pipeline_mode = #tpu.pipeline_mode<synchronous>, transform_indices = @transform_0, window_bounds = array<i64: 2, 1, 128>}, {pipeline_mode = #tpu.pipeline_mode<synchronous>, transform_indices = @transform_1, window_bounds = array<i64: 256, 1>}, {pipeline_mode = #tpu.pipeline_mode<synchronous>, transform_indices = @transform_2, window_bounds = array<i64: 256, 128>}, {pipeline_mode = #tpu.pipeline_mode<synchronous>, transform_indices = @transform_3, window_bounds = array<i64: 128, 128>}, {pipeline_mode = #tpu.pipeline_mode<synchronous>, transform_indices = @transform_4, window_bounds = array<i64: 1, 128>}, {pipeline_mode = #tpu.pipeline_mode<synchronous>, transform_indices = @transform_5, window_bounds = array<i64: 128, 256>}, {pipeline_mode = #tpu.pipeline_mode<synchronous>, transform_indices = @transform_6, window_bounds = array<i64: 1, 128>}, {pipeline_mode = #tpu.pipeline_mode<synchronous>, transform_indices = @transform_7, window_bounds = array<i64: 1, 128>}, {transform_indices = @transform_8, window_bounds = array<i64: 1>}, {pipeline_mode = #tpu.pipeline_mode<synchronous>, transform_indices = @transform_9, window_bounds = array<i64: 256, 256>}, {pipeline_mode = #tpu.pipeline_mode<synchronous>, transform_indices = @transform_10, window_bounds = array<i64: 2, 1, 128>}]} {
    %0 = tpu.iota {dimensions = array<i32: 1>} : vector<256x256xi32>
    %c0 = arith.constant 0 : index
    %c0_0 = arith.constant 0 : index
    %1 = vector.load %arg3[%c0, %c0_0] : memref<256x1xi32, #tpu.memory_space<vmem>>, vector<256x1xi32>
    %2 = vector.broadcast %1 : vector<256x1xi32> to vector<256x256xi32>
    %3 = arith.cmpi eq, %2, %0 : vector<256x256xi32>
    %4 = arith.extui %3 : vector<256x256xi1> to vector<256x256xi32>
    %5 = arith.sitofp %4 : vector<256x256xi32> to vector<256x256xf32>
    %6 = arith.truncf %5 : vector<256x256xf32> to vector<256x256xbf16>
    %c0_1 = arith.constant 0 : index
    %c0_2 = arith.constant 0 : index
    %7 = vector.load %arg4[%c0_1, %c0_2] : memref<256x128xbf16, #tpu.memory_space<vmem>>, vector<256x128xbf16>
    %cst = arith.constant dense<0.000000e+00> : vector<256x128xf32>
    %8 = tpu.matmul %6, %7, %cst {dimension_numbers = #tpu.dot_dimension_numbers<[1], [0], [0], [1], [0, 0, 1, 1], [], []>} : vector<256x256xbf16>, vector<256x128xbf16>, vector<256x128xf32> -> vector<256x128xf32>
    %9 = arith.truncf %8 : vector<256x128xf32> to vector<256x128xbf16>
    %c0_3 = arith.constant 0 : index
    %c0_4 = arith.constant 0 : index
    %10 = vector.load %arg5[%c0_3, %c0_4] : memref<128x128xbf16, #tpu.memory_space<vmem>>, vector<128x128xbf16>
    %cst_5 = arith.constant dense<0.000000e+00> : vector<256x128xf32>
    %11 = tpu.matmul %9, %10, %cst_5 {dimension_numbers = #tpu.dot_dimension_numbers<[1], [0], [0], [1], [0, 0, 1, 1], [], []>} : vector<256x128xbf16>, vector<128x128xbf16>, vector<256x128xf32> -> vector<256x128xf32>
    %c0_6 = arith.constant 0 : index
    %c0_7 = arith.constant 0 : index
    %12 = vector.load %arg6[%c0_6, %c0_7] : memref<1x128xf32, #tpu.memory_space<vmem>>, vector<1x128xf32>
    %13 = vector.broadcast %12 : vector<1x128xf32> to vector<256x128xf32>
    %14 = arith.addf %11, %13 : vector<256x128xf32>
    %15 = math.tanh %14 : vector<256x128xf32>
    %16 = arith.truncf %15 : vector<256x128xf32> to vector<256x128xbf16>
    %c0_8 = arith.constant 0 : index
    %c0_9 = arith.constant 0 : index
    %17 = vector.load %arg7[%c0_8, %c0_9] : memref<128x256xbf16, #tpu.memory_space<vmem>>, vector<128x256xbf16>
    %cst_10 = arith.constant dense<0.000000e+00> : vector<256x256xf32>
    %18 = tpu.matmul %16, %17, %cst_10 {dimension_numbers = #tpu.dot_dimension_numbers<[1], [0], [0], [1], [0, 0, 1, 1], [], []>} : vector<256x128xbf16>, vector<128x256xbf16>, vector<256x256xf32> -> vector<256x256xf32>
    %c0_11 = arith.constant 0 : index
    %c0_12 = arith.constant 0 : index
    %19 = vector.load %arg11[%c0_11, %c0_12] : memref<256x256xf32, #tpu.memory_space<vmem>>, vector<256x256xf32>
    tpu.vector_store %arg11[%c0_11, %c0_12], %18 {strides = array<i32>} : memref<256x256xf32, #tpu.memory_space<vmem>>, vector<256x256xf32>,
    %20 = tpu.iota {dimensions = array<i32: 1>} : vector<1x128xi32>
    %21 = tpu.iota {dimensions = array<i32: 0>} : vector<128x128xi32>
    %22 = tpu.iota {dimensions = array<i32: 1>} : vector<128x128xi32>
    %23 = arith.cmpi slt, %21, %22 : vector<128x128xi32>
    %24 = arith.extui %23 : vector<128x128xi1> to vector<128x128xi32>
    %25 = arith.sitofp %24 : vector<128x128xi32> to vector<128x128xf32>
    %26 = arith.truncf %25 : vector<128x128xf32> to vector<128x128xbf16>
    %c0_13 = arith.constant 0 : index
    %c0_14 = arith.constant 0 : index
    %27 = vector.load %arg9[%c0_13, %c0_14] : memref<1x128xf32, #tpu.memory_space<vmem>>, vector<1x128xf32>
    %c0_15 = arith.constant 0 : index
    %c0_16 = arith.constant 0 : index
    %28 = vector.load %arg8[%c0_15, %c0_16] : memref<1x128xbf16, #tpu.memory_space<vmem>>, vector<1x128xbf16>
    %c0_17 = arith.constant 0 : index
    %29 = memref.load %arg1[%c0_17] : memref<1xi32, #tpu.memory_space<smem>>
    %c0_18 = arith.constant 0 : index
    %30 = memref.load %arg10[%c0_18] : memref<1xf32, #tpu.memory_space<smem>>
    %31 = vector.extract_strided_slice %16 {offsets = [0, 0], sizes = [128, 128], strides = [1, 1]} : vector<256x128xbf16> to vector<128x128xbf16>
    %cst_19 = arith.constant dense<0.000000e+00> : vector<1x128xf32>
    %32 = tpu.matmul %28, %31, %cst_19 {dimension_numbers = #tpu.dot_dimension_numbers<[1], [1], [0], [0], [0, 0, 1, 0], [], []>} : vector<1x128xbf16>, vector<128x128xbf16>, vector<1x128xf32> -> vector<1x128xf32>
    %c0_20 = arith.constant 0 : index
    %c0_21 = arith.constant 0 : index
    %c0_22 = arith.constant 0 : index
    %33 = vector.load %arg2[%c0_20, %c0_21, %c0_22] : memref<2x1x128xi32, #tpu.memory_space<vmem>>, vector<1x1x128xi32>
    %34 = vector.shape_cast %33 : vector<1x1x128xi32> to vector<1x128xi32>
    %35 = vector.broadcast %29 : i32 to vector<1x128xi32>
    %36 = arith.cmpi eq, %34, %35 : vector<1x128xi32>
    %c128_i32 = arith.constant 128 : i32
    %37 = vector.broadcast %c128_i32 : i32 to vector<1x128xi32>
    %38 = arith.select %36, %20, %37 : vector<1x128xi1>, vector<1x128xi32>
    %39 = vector.shape_cast %38 : vector<1x128xi32> to vector<1x1x128xi32>
    %cst_23 = arith.constant dense<2147483647> : vector<1xi32>
    %40 = vector.multi_reduction <minsi>, %39, %cst_23 [1, 2] : vector<1x1x128xi32> to vector<1xi32>
    %41 = vector.shape_cast %40 : vector<1xi32> to vector<1x1x1xi32>
    %42 = vector.extract %41[0, 0, 0] : i32 from vector<1x1x1xi32>
    %43 = vector.broadcast %42 : i32 to vector<1x128xi32>
    %44 = arith.cmpi slt, %20, %43 : vector<1x128xi32>
    %cst_24 = arith.constant 0.000000e+00 : f32
    %45 = vector.broadcast %cst_24 : f32 to vector<1x128xf32>
    %46 = arith.select %44, %45, %32 : vector<1x128xi1>, vector<1x128xf32>
    %cst_25 = arith.constant 0.000000e+00 : f32
    %47 = vector.broadcast %cst_25 : f32 to vector<1x128xf32>
    %48 = arith.cmpf one, %46, %47 : vector<1x128xf32>
    %49 = arith.extui %48 : vector<1x128xi1> to vector<1x128xi32>
    %50 = arith.sitofp %49 : vector<1x128xi32> to vector<1x128xf32>
    %51 = arith.truncf %50 : vector<1x128xf32> to vector<1x128xbf16>
    %cst_26 = arith.constant dense<0.000000e+00> : vector<1x128xf32>
    %52 = tpu.matmul %51, %26, %cst_26 {dimension_numbers = #tpu.dot_dimension_numbers<[1], [0], [0], [1], [0, 0, 1, 1], [], []>} : vector<1x128xbf16>, vector<128x128xbf16>, vector<1x128xf32> -> vector<1x128xf32>
    %53 = arith.fptosi %52 : vector<1x128xf32> to vector<1x128xi32>
    %54 = arith.truncf %46 : vector<1x128xf32> to vector<1x128xbf16>
    %55 = vector.broadcast %53 : vector<1x128xi32> to vector<128x128xi32>
    %56 = arith.cmpi eq, %21, %55 : vector<128x128xi32>
    %57 = arith.extui %56 : vector<128x128xi1> to vector<128x128xi32>
    %58 = arith.sitofp %57 : vector<128x128xi32> to vector<128x128xf32>
    %59 = arith.truncf %58 : vector<128x128xf32> to vector<128x128xbf16>
    %cst_27 = arith.constant dense<0.000000e+00> : vector<1x128xf32>
    %60 = tpu.matmul %54, %59, %cst_27 {dimension_numbers = #tpu.dot_dimension_numbers<[1], [1], [0], [0], [0, 0, 1, 0], [], []>} : vector<1x128xbf16>, vector<128x128xbf16>, vector<1x128xf32> -> vector<1x128xf32>
    %61 = arith.mulf %27, %60 : vector<1x128xf32>
    %62 = vector.shape_cast %61 : vector<1x128xf32> to vector<1x1x128xf32>
    %cst_28 = arith.constant dense<0.000000e+00> : vector<1xf32>
    %63 = vector.multi_reduction <add>, %62, %cst_28 [1, 2] : vector<1x1x128xf32> to vector<1xf32>
    %64 = vector.shape_cast %63 : vector<1xf32> to vector<1x1x1xf32>
    %65 = vector.extract %64[0, 0, 0] : f32 from vector<1x1x1xf32>
    %66 = arith.addf %65, %30 : f32
    %67 = arith.negf %66 : f32
    %68 = math.exp %67 : f32
    %cst_29 = arith.constant 1.000000e+00 : f32
    %69 = arith.addf %cst_29, %68 : f32
    %70 = arith.divf %cst_29, %69 : f32
    %71 = vector.broadcast %70 : f32 to vector<1x128xf32>
    %c0_30 = arith.constant 0 : index
    %c0_31 = arith.constant 0 : index
    %c0_32 = arith.constant 0 : index
    %72 = vector.load %arg12[%c0_30, %c0_31, %c0_32] : memref<2x1x128xf32, #tpu.memory_space<vmem>>, vector<1x1x128xf32>
    %73 = vector.shape_cast %72 : vector<1x1x128xf32> to vector<1x128xf32>
    %74 = vector.shape_cast %71 : vector<1x128xf32> to vector<1x1x128xf32>
    tpu.vector_store %arg12[%c0_30, %c0_31, %c0_32], %74 {strides = array<i32>} : memref<2x1x128xf32, #tpu.memory_space<vmem>>, vector<1x1x128xf32>,
    %75 = vector.extract_strided_slice %16 {offsets = [128, 0], sizes = [128, 128], strides = [1, 1]} : vector<256x128xbf16> to vector<128x128xbf16>
    %cst_33 = arith.constant dense<0.000000e+00> : vector<1x128xf32>
    %76 = tpu.matmul %28, %75, %cst_33 {dimension_numbers = #tpu.dot_dimension_numbers<[1], [1], [0], [0], [0, 0, 1, 0], [], []>} : vector<1x128xbf16>, vector<128x128xbf16>, vector<1x128xf32> -> vector<1x128xf32>
    %c1 = arith.constant 1 : index
    %c0_34 = arith.constant 0 : index
    %c0_35 = arith.constant 0 : index
    %77 = vector.load %arg2[%c1, %c0_34, %c0_35] : memref<2x1x128xi32, #tpu.memory_space<vmem>>, vector<1x1x128xi32>
    %78 = vector.shape_cast %77 : vector<1x1x128xi32> to vector<1x128xi32>
    %79 = vector.broadcast %29 : i32 to vector<1x128xi32>
    %80 = arith.cmpi eq, %78, %79 : vector<1x128xi32>
    %c128_i32_36 = arith.constant 128 : i32
    %81 = vector.broadcast %c128_i32_36 : i32 to vector<1x128xi32>
    %82 = arith.select %80, %20, %81 : vector<1x128xi1>, vector<1x128xi32>
    %83 = vector.shape_cast %82 : vector<1x128xi32> to vector<1x1x128xi32>
    %cst_37 = arith.constant dense<2147483647> : vector<1xi32>
    %84 = vector.multi_reduction <minsi>, %83, %cst_37 [1, 2] : vector<1x1x128xi32> to vector<1xi32>
    %85 = vector.shape_cast %84 : vector<1xi32> to vector<1x1x1xi32>
    %86 = vector.extract %85[0, 0, 0] : i32 from vector<1x1x1xi32>
    %87 = vector.broadcast %86 : i32 to vector<1x128xi32>
    %88 = arith.cmpi slt, %20, %87 : vector<1x128xi32>
    %cst_38 = arith.constant 0.000000e+00 : f32
    %89 = vector.broadcast %cst_38 : f32 to vector<1x128xf32>
    %90 = arith.select %88, %89, %76 : vector<1x128xi1>, vector<1x128xf32>
    %cst_39 = arith.constant 0.000000e+00 : f32
    %91 = vector.broadcast %cst_39 : f32 to vector<1x128xf32>
    %92 = arith.cmpf one, %90, %91 : vector<1x128xf32>
    %93 = arith.extui %92 : vector<1x128xi1> to vector<1x128xi32>
    %94 = arith.sitofp %93 : vector<1x128xi32> to vector<1x128xf32>
    %95 = arith.truncf %94 : vector<1x128xf32> to vector<1x128xbf16>
    %cst_40 = arith.constant dense<0.000000e+00> : vector<1x128xf32>
    %96 = tpu.matmul %95, %26, %cst_40 {dimension_numbers = #tpu.dot_dimension_numbers<[1], [0], [0], [1], [0, 0, 1, 1], [], []>} : vector<1x128xbf16>, vector<128x128xbf16>, vector<1x128xf32> -> vector<1x128xf32>
    %97 = arith.fptosi %96 : vector<1x128xf32> to vector<1x128xi32>
    %98 = arith.truncf %90 : vector<1x128xf32> to vector<1x128xbf16>
    %99 = vector.broadcast %97 : vector<1x128xi32> to vector<128x128xi32>
    %100 = arith.cmpi eq, %21, %99 : vector<128x128xi32>
    %101 = arith.extui %100 : vector<128x128xi1> to vector<128x128xi32>
    %102 = arith.sitofp %101 : vector<128x128xi32> to vector<128x128xf32>
    %103 = arith.truncf %102 : vector<128x128xf32> to vector<128x128xbf16>
    %cst_41 = arith.constant dense<0.000000e+00> : vector<1x128xf32>
    %104 = tpu.matmul %98, %103, %cst_41 {dimension_numbers = #tpu.dot_dimension_numbers<[1], [1], [0], [0], [0, 0, 1, 0], [], []>} : vector<1x128xbf16>, vector<128x128xbf16>, vector<1x128xf32> -> vector<1x128xf32>
    %105 = arith.mulf %27, %104 : vector<1x128xf32>
    %106 = vector.shape_cast %105 : vector<1x128xf32> to vector<1x1x128xf32>
    %cst_42 = arith.constant dense<0.000000e+00> : vector<1xf32>
    %107 = vector.multi_reduction <add>, %106, %cst_42 [1, 2] : vector<1x1x128xf32> to vector<1xf32>
    %108 = vector.shape_cast %107 : vector<1xf32> to vector<1x1x1xf32>
    %109 = vector.extract %108[0, 0, 0] : f32 from vector<1x1x1xf32>
    %110 = arith.addf %109, %30 : f32
    %111 = arith.negf %110 : f32
    %112 = math.exp %111 : f32
    %cst_43 = arith.constant 1.000000e+00 : f32
    %113 = arith.addf %cst_43, %112 : f32
    %114 = arith.divf %cst_43, %113 : f32
    %115 = vector.broadcast %114 : f32 to vector<1x128xf32>
    %c1_44 = arith.constant 1 : index
    %c0_45 = arith.constant 0 : index
    %c0_46 = arith.constant 0 : index
    %116 = vector.load %arg12[%c1_44, %c0_45, %c0_46] : memref<2x1x128xf32, #tpu.memory_space<vmem>>, vector<1x1x128xf32>
    %117 = vector.shape_cast %116 : vector<1x1x128xf32> to vector<1x128xf32>
    %118 = vector.shape_cast %115 : vector<1x128xf32> to vector<1x1x128xf32>
    tpu.vector_store %arg12[%c1_44, %c0_45, %c0_46], %118 {strides = array<i32>} : memref<2x1x128xf32, #tpu.memory_space<vmem>>, vector<1x1x128xf32>,
    return
  }
  func.func @transform_0(%arg0: i32, %arg1: memref<1xi32, #tpu.memory_space<smem>>) -> (i32, i32, i32) {
    %c0_i32 = arith.constant 0 : i32
    %c0_i32_0 = arith.constant 0 : i32
    %c0_i32_1 = arith.constant 0 : i32
    %c0_i32_2 = arith.constant 0 : i32
    return %c0_i32, %c0_i32_0, %c0_i32_1 : i32, i32, i32
  }
  func.func @transform_1(%arg0: i32, %arg1: memref<1xi32, #tpu.memory_space<smem>>) -> (i32, i32) {
    %c0_i32 = arith.constant 0 : i32
    %c0_i32_0 = arith.constant 0 : i32
    %c0_i32_1 = arith.constant 0 : i32
    return %c0_i32, %c0_i32_0 : i32, i32
  }
  func.func @transform_2(%arg0: i32, %arg1: memref<1xi32, #tpu.memory_space<smem>>) -> (i32, i32) {
    %c0_i32 = arith.constant 0 : i32
    %c0_i32_0 = arith.constant 0 : i32
    %c0_i32_1 = arith.constant 0 : i32
    return %c0_i32, %c0_i32_0 : i32, i32
  }
  func.func @transform_3(%arg0: i32, %arg1: memref<1xi32, #tpu.memory_space<smem>>) -> (i32, i32) {
    %c0_i32 = arith.constant 0 : i32
    %c0_i32_0 = arith.constant 0 : i32
    %c0_i32_1 = arith.constant 0 : i32
    return %c0_i32, %c0_i32_0 : i32, i32
  }
  func.func @transform_4(%arg0: i32, %arg1: memref<1xi32, #tpu.memory_space<smem>>) -> (i32, i32) {
    %c0_i32 = arith.constant 0 : i32
    %c0_i32_0 = arith.constant 0 : i32
    %c0_i32_1 = arith.constant 0 : i32
    return %c0_i32, %c0_i32_0 : i32, i32
  }
  func.func @transform_5(%arg0: i32, %arg1: memref<1xi32, #tpu.memory_space<smem>>) -> (i32, i32) {
    %c0_i32 = arith.constant 0 : i32
    %c0_i32_0 = arith.constant 0 : i32
    %c0_i32_1 = arith.constant 0 : i32
    return %c0_i32, %c0_i32_0 : i32, i32
  }
  func.func @transform_6(%arg0: i32, %arg1: memref<1xi32, #tpu.memory_space<smem>>) -> (i32, i32) {
    %c0_i32 = arith.constant 0 : i32
    %c0_i32_0 = arith.constant 0 : i32
    %c0_i32_1 = arith.constant 0 : i32
    return %c0_i32, %c0_i32_0 : i32, i32
  }
  func.func @transform_7(%arg0: i32, %arg1: memref<1xi32, #tpu.memory_space<smem>>) -> (i32, i32) {
    %c0_i32 = arith.constant 0 : i32
    %c0_i32_0 = arith.constant 0 : i32
    %c0_i32_1 = arith.constant 0 : i32
    return %c0_i32, %c0_i32_0 : i32, i32
  }
  func.func @transform_8(%arg0: i32, %arg1: memref<1xi32, #tpu.memory_space<smem>>) -> i32 {
    %c0_i32 = arith.constant 0 : i32
    %c0_i32_0 = arith.constant 0 : i32
    return %c0_i32 : i32
  }
  func.func @transform_9(%arg0: i32, %arg1: memref<1xi32, #tpu.memory_space<smem>>) -> (i32, i32) {
    %c0_i32 = arith.constant 0 : i32
    %c0_i32_0 = arith.constant 0 : i32
    %c0_i32_1 = arith.constant 0 : i32
    return %c0_i32, %c0_i32_0 : i32, i32
  }
  func.func @transform_10(%arg0: i32, %arg1: memref<1xi32, #tpu.memory_space<smem>>) -> (i32, i32, i32) {
    %c0_i32 = arith.constant 0 : i32
    %c0_i32_0 = arith.constant 0 : i32
    %c0_i32_1 = arith.constant 0 : i32
    %c0_i32_2 = arith.constant 0 : i32
    return %c0_i32, %c0_i32_0, %c0_i32_1 : i32, i32, i32
  }
}

</mosaic_0001>

<bundles_post_ra>
// kernel: bart_mlp_forward.1
= control target key start
LH: loop header
LB: loop body
LE: loop exit
PB: predicated region body
PF: predicated region fallthrough
CT: control target
= control target key end

     0   :  { %19 = vsyncpa [#allocation6], 0  ;;  %s3690_s0 = inlined_call_operand.<no memory space> [shape: s32[1], index: 0, kind: input, shape index: {}]   ;;  %s3691_s1 = inlined_call_operand.vmem [shape: s32[2,1,128], index: 1, kind: input, shape index: {}]   ;;  %s3692_s2 = inlined_call_operand.vmem [shape: s32[256,1], index: 2, kind: input, shape index: {}]   ;;  %s3693_s3 = inlined_call_operand.vmem [shape: bf16[256,128], index: 3, kind: input, shape index: {}]   ;;  %s3694_s4 = inlined_call_operand.hbm [shape: bf16[128,128], index: 4, kind: input, shape index: {}]   ;;  %s3695_s5 = inlined_call_operand.vmem [shape: f32[1,128], index: 5, kind: input, shape index: {}]   ;;  %s3696_s6 = inlined_call_operand.vmem [shape: bf16[128,256], index: 6, kind: input, shape index: {}]   ;;  %s3697_s7 = inlined_call_operand.vmem [shape: bf16[1,128], index: 7, kind: input, shape index: {}]   ;;  %s3698_s8 = inlined_call_operand.vmem [shape: f32[1,128], index: 8, kind: input, shape index: {}]   ;;  %s3699_s9 = inlined_call_operand.<no memory space> [shape: f32[1], index: 9, kind: input, shape index: {}]   ;;  %s3700_s10 = inlined_call_operand.hbm [shape: f32[256,256], index: 10, kind: output, shape index: {0}]   ;;  %s3701_s11 = inlined_call_operand.vmem [shape: f32[2,1,128], index: 11, kind: output, shape index: {1}]  }
   0x1   :  { %20 = vsyncpa [#allocation7], 0  ;;  %s2801_s17 = smov [#allocation5]   ;;  %s2753_s21 = scalar_lea.hbm %s3694_s4, 1024 }
   0x2   :  { %s32_s18 = sshll.u32 %s2801_s17, 4  ;;  %p2754_p0 = scmp.ne.s32.totalorder %s3694_s4, %s2753_s21  ;;  %s33_s18 = int_to_ptr.vmem [resolvable:$true] %s32_s18 }
   0x3   :  { %p2757_p1 = scmp.lt.u32.totalorder %s2753_s21, %s3694_s4 }
   0x5   :  { %p2759_p2 = pnand %p2757_p1, %p2754_p0 }
   0x7   :  { %2762 = shalt.err (!%p2759_p2)
}
   0x8   :  { %s2763_s26 = scalar_lea.vmem %s33_s18, 1024  ;;  %p2768_p4 = scmp.lt.s32.totalorder %s33_s18, %s33_s18 }
   0x9   :  { %p2764_p3 = scmp.ne.s32.totalorder %s33_s18, %s2763_s26  ;;  %p2769_p5 = scmp.lt.s32.totalorder %s2763_s26, %s2763_s26 }
   0xb   :  { %p2770_p6 = por %p2769_p5, %p2768_p4 }
   0xd   :  { %p2771_p7 = pnand %p2770_p6, %p2764_p3 }
   0xf   :  { %2774 = shalt.err (!%p2771_p7)
}
  0x10   :  { %s2802_s27 = smov 64   ;;  %s2803_s28 = smov 4  }
  0x11   :  { %38 = dma.hbm_to_vmem [thread:$0]  %s3694_s4, 1024, %s33_s18, [#allocation6], %s2802_s27, %s2802_s27, %s2803_s28  }
  0x12   :  { %2797 = dma.done.wait [#allocation6], 1024  }
  0x13   :  { %2798 = vsyncadd [#allocation6], 4294966272  ;;  %v2804_v0 = vmov 0   ;;  %v58_v1 = vld [vmem:[%s3692_s2 + $0x10] sm:$0xff]  ;;  %v56_v2 = vld [vmem:[%s3692_s2] sm:$0xff]  ;;  %v53_v50 = vlaneseq  ;;  %s2808_s19 = smov [#allocation8]  }
  0x14   :  { %2632 = vset.pattern.permute.xlu1 %v2804_v0  ;;  %2631 = vset.pattern.permute.xlu0 %v2804_v0  ;;  %v59_v3 = vld [vmem:[%s3692_s2 + $0x18] sm:$0xff]  ;;  %v57_v4 = vld [vmem:[%s3692_s2 + $0x8] sm:$0xff]  ;;  %v60_v6 = vld [vmem:[%s3692_s2 + $0x20] sm:$0xff]  ;;  %v2805_v59 = vmov 1.0|1.0  }
  0x15   :  { %95 = vperm.xlu1 %2632, %v58_v1   ;;  %89 = vperm.xlu0 %2631, %v56_v2   ;;  %v61_v5 = vld [vmem:[%s3692_s2 + $0x28] sm:$0xff]  ;;  %v63_v7 = vld [vmem:[%s3692_s2 + $0x38] sm:$0xff]  ;;  %v62_v8 = vld [vmem:[%s3692_s2 + $0x30] sm:$0xff]  ;;  %v3033_v51 = vand.u32 127, %v53_v50 }
  0x16   :  { %v2633_v9 = vld [vmem:[%s3693_s3 + $0x40] sm:$0xff]   ;;  %v65_v10 = vld [vmem:[%s3692_s2 + $0x48] sm:$0xff]  ;;  %v2637_v15 = vld [vmem:[%s3693_s3 + $0x50] sm:$0xff]  }
  0x17   :  { %v2634_v11 = vld [vmem:[%s3693_s3] sm:$0xff]   ;;  %v2635_v12 = vld [vmem:[%s3693_s3 + $0x48] sm:$0xff]   ;;  %2227 = vmatprep.subr.bf16.mxu0 %v2633_v9  ;;  %2585 = vmatprep.subr.bf16.mxu1 %v2633_v9  ;;  %v67_v16 = vld [vmem:[%s3692_s2 + $0x58] sm:$0xff]  ;;  %v3036_v54 = vadd.s32 128, %v3033_v51 }
  0x18   :  { %v64_v13 = vld [vmem:[%s3692_s2 + $0x40] sm:$0xff]  ;;  %2228 = vmatpush3.bf16.msra.mxu0 %v2634_v11  ;;  %v2636_v14 = vld [vmem:[%s3693_s3 + $0x8] sm:$0xff]   ;;  %2593 = vmatpush3.bf16.msra.mxu1 %v2634_v11  ;;  %v66_v17 = vld [vmem:[%s3692_s2 + $0x50] sm:$0xff] }
  0x19   :  { %98 = vperm.xlu1 %2632, %v59_v3   ;;  %92 = vperm.xlu0 %2631, %v57_v4   ;;  %v2638_v18 = vld [vmem:[%s3693_s3 + $0x10] sm:$0xff]   ;;  %v2639_v19 = vld [vmem:[%s3693_s3 + $0x58] sm:$0xff]   ;;  %v69_v20 = vld [vmem:[%s3692_s2 + $0x68] sm:$0xff] }
  0x1a   :  { %2229 = vmatprep.subr.bf16.mxu0 %v2635_v12  ;;  %2586 = vmatprep.subr.bf16.mxu1 %v2635_v12  ;;  %v68_v21 = vld [vmem:[%s3692_s2 + $0x60] sm:$0xff]  ;;  %v2640_v22 = vld [vmem:[%s3693_s3 + $0x18] sm:$0xff]   ;;  %v70_v24 = vld [vmem:[%s3692_s2 + $0x70] sm:$0xff] }
  0x1b   :  { %v71_v23 = vld [vmem:[%s3692_s2 + $0x78] sm:$0xff]  ;;  %v2641_v25 = vld [vmem:[%s3693_s3 + $0x60] sm:$0xff]   ;;  %v2643_v27 = vld [vmem:[%s3693_s3 + $0x68] sm:$0xff]  }
  0x1c   :  { %2230 = vmatpush3.bf16.msra.mxu0 %v2636_v14  ;;  %2594 = vmatpush3.bf16.msra.mxu1 %v2636_v14  ;;  %v2642_v26 = vld [vmem:[%s3693_s3 + $0x20] sm:$0xff]   ;;  %v81_v28 = vld [vmem:[%s3692_s2 + $0xc8] sm:$0xff]  ;;  %v2645_v31 = vld [vmem:[%s3693_s3 + $0x70] sm:$0xff]  }
  0x1d   :  { %104 = vperm.xlu1 %2632, %v61_v5   ;;  %101 = vperm.xlu0 %2631, %v60_v6   ;;  %v80_v29 = vld [vmem:[%s3692_s2 + $0xc0] sm:$0xff]  ;;  %v2644_v30 = vld [vmem:[%s3693_s3 + $0x28] sm:$0xff]   ;;  %v83_v32 = vld [vmem:[%s3692_s2 + $0xd8] sm:$0xff] }
  0x1e   :  { %2231 = vmatprep.subr.bf16.mxu0 %v2637_v15  ;;  %2587 = vmatprep.subr.bf16.mxu1 %v2637_v15  ;;  %v82_v33 = vld [vmem:[%s3692_s2 + $0xd0] sm:$0xff]  ;;  %v2647_v35 = vld [vmem:[%s3693_s3 + $0x78] sm:$0xff]   ;;  %v85_v36 = vld [vmem:[%s3692_s2 + $0xe8] sm:$0xff] }
  0x1f   :  { %v2646_v34 = vld [vmem:[%s3693_s3 + $0x30] sm:$0xff]   ;;  %v84_v37 = vld [vmem:[%s3692_s2 + $0xe0] sm:$0xff]  ;;  %v2648_v38 = vld [vmem:[%s3693_s3 + $0x38] sm:$0xff]  }
  0x20   :  { %2232 = vmatpush3.bf16.msra.mxu0 %v2638_v18  ;;  %2595 = vmatpush3.bf16.msra.mxu1 %v2638_v18  ;;  %v87_v39 = vld [vmem:[%s3692_s2 + $0xf8] sm:$0xff]  ;;  %v86_v40 = vld [vmem:[%s3692_s2 + $0xf0] sm:$0xff]  ;;  %v73_v41 = vld [vmem:[%s3692_s2 + $0x88] sm:$0xff] }
  0x21   :  { %110 = vperm.xlu1 %2632, %v63_v7   ;;  %107 = vperm.xlu0 %2631, %v62_v8   ;;  %v72_v42 = vld [vmem:[%s3692_s2 + $0x80] sm:$0xff]  ;;  %v75_v43 = vld [vmem:[%s3692_s2 + $0x98] sm:$0xff]  ;;  %v74_v44 = vld [vmem:[%s3692_s2 + $0x90] sm:$0xff] }
  0x22   :  { %2233 = vmatprep.subr.bf16.mxu0 %v2639_v19  ;;  %2588 = vmatprep.subr.bf16.mxu1 %v2639_v19  ;;  %v77_v45 = vld [vmem:[%s3692_s2 + $0xa8] sm:$0xff]  ;;  %v76_v46 = vld [vmem:[%s3692_s2 + $0xa0] sm:$0xff]  ;;  %v79_v47 = vld [vmem:[%s3692_s2 + $0xb8] sm:$0xff] }
  0x23   :  { %v78_v48 = vld [vmem:[%s3692_s2 + $0xb0] sm:$0xff]  ;;  %v3029_v49 = vld [vmem:[#allocation5] sm:$0xff]   ;;  %v2650_v9 = vld [vmem:[#allocation5 + $0x8] sm:$0xff]  }
  0x24   :  { %2234 = vmatpush3.bf16.msra.mxu0 %v2640_v22  ;;  %2596 = vmatpush3.bf16.msra.mxu1 %v2640_v22  ;;  %v2651_v12 = vld [vmem:[#allocation5 + $0x10] sm:$0xff]   ;;  %v2652_v15 = vld [vmem:[#allocation5 + $0x18] sm:$0xff]  }
  0x25   :  { %116 = vperm.xlu1 %2632, %v65_v10   ;;  %113 = vperm.xlu0 %2631, %v64_v13  }
  0x26   :  { %2235 = vmatprep.subr.bf16.mxu0 %v2641_v25  ;;  %2589 = vmatprep.subr.bf16.mxu1 %v2641_v25 }
  0x28   :  { %2236 = vmatpush3.bf16.msra.mxu0 %v2642_v26  ;;  %2597 = vmatpush3.bf16.msra.mxu1 %v2642_v26  ;;  %v2653_v26 = vld [vmem:[#allocation5 + $0x20] sm:$0xff]  }
  0x29   :  { %122 = vperm.xlu1 %2632, %v67_v16   ;;  %119 = vperm.xlu0 %2631, %v66_v17  }
  0x2a   :  { %2237 = vmatprep.subr.bf16.mxu0 %v2643_v27  ;;  %2590 = vmatprep.subr.bf16.mxu1 %v2643_v27  ;;  %v2654_v27 = vld [vmem:[#allocation5 + $0x28] sm:$0xff]  }
  0x2c   :  { %2238 = vmatpush3.bf16.msra.mxu0 %v2644_v30  ;;  %2598 = vmatpush3.bf16.msra.mxu1 %v2644_v30  ;;  %v1464_v30 = vstv %s3690_s0 }
  0x2d   :  { %128 = vperm.xlu1 %2632, %v69_v20   ;;  %125 = vperm.xlu0 %2631, %v68_v21  }
  0x2e   :  { %2239 = vmatprep.subr.bf16.mxu0 %v2645_v31  ;;  %2591 = vmatprep.subr.bf16.mxu1 %v2645_v31  ;;  %v2656_v31 = vld [vmem:[#allocation5 + $0x38] sm:$0xff]  }
  0x30   :  { %2240 = vmatpush3.bf16.msra.mxu0 %v2646_v34  ;;  %2599 = vmatpush3.bf16.msra.mxu1 %v2646_v34 }
  0x31   :  { %134 = vperm.xlu1 %2632, %v71_v23   ;;  %131 = vperm.xlu0 %2631, %v70_v24  }
  0x32   :  { %2241 = vmatprep.subr.bf16.mxu0 %v2647_v35  ;;  %2592 = vmatprep.subr.bf16.mxu1 %v2647_v35 }
  0x34   :  { %2242 = vmatpush3.bf16.msra.mxu0 %v2648_v38  ;;  %2600 = vmatpush3.bf16.msra.mxu1 %v2648_v38 }
  0x35   :  { %164 = vperm.xlu1 %2632, %v81_v28   ;;  %161 = vperm.xlu0 %2631, %v80_v29   ;;  %v2655_v28 = vld [vmem:[#allocation5 + $0x30] sm:$0xff]   ;;  %v1463_v29 = vld [vmem:[%s3691_s1] sm:$0x1] }
  0x36   :  { %2417 = vmatprep.subr.bf16.mxu1 %v3029_v49 }
  0x39   :  { %170 = vperm.xlu1 %2632, %v83_v32   ;;  %167 = vperm.xlu0 %2631, %v82_v33  }
  0x3d   :  { %176 = vperm.xlu1 %2632, %v85_v36   ;;  %173 = vperm.xlu0 %2631, %v84_v37   ;;  %v2659_v36 = vld [vmem:[%s3696_s6 + $0x4] ss:$8 sps:$4 sm:$0xff]  }
  0x41   :  { %182 = vperm.xlu1 %2632, %v87_v39   ;;  %179 = vperm.xlu0 %2631, %v86_v40  }
  0x45   :  { %140 = vperm.xlu1 %2632, %v73_v41   ;;  %137 = vperm.xlu0 %2631, %v72_v42  }
  0x49   :  { %146 = vperm.xlu1 %2632, %v75_v43   ;;  %143 = vperm.xlu0 %2631, %v74_v44  }
  0x4d   :  { %152 = vperm.xlu1 %2632, %v77_v45   ;;  %149 = vperm.xlu0 %2631, %v76_v46  }
  0x51   :  { %158 = vperm.xlu1 %2632, %v79_v47   ;;  %155 = vperm.xlu0 %2631, %v78_v48  }
  0x94   :  { %v96_v52 = vpop.permute.xlu1 %95  ;;  %v90_v53 = vpop.permute.xlu0 %89 }
  0x95   :  { %vm189_vm0 = vcmp.eq.s32.totalorder %v96_v52, %v3036_v54  ;;  %vm184_vm4 = vcmp.eq.s32.totalorder %v90_v53, %v3033_v51  ;;  %vm185_vm7 = vcmp.eq.s32.totalorder %v90_v53, %v3036_v54  ;;  %vm188_vm9 = vcmp.eq.s32.totalorder %v96_v52, %v3033_v51  ;;  %v2657_v52 = vld [vmem:[%s3696_s6] ss:$8 sps:$4 sm:$0xff]  }
  0x98   :  { %v99_v55 = vpop.permute.xlu1 %98  ;;  %v93_v56 = vpop.permute.xlu0 %92 }
  0x99   :  { %vm191_vm1 = vcmp.eq.s32.totalorder %v99_v55, %v3036_v54  ;;  %vm186_vm2 = vcmp.eq.s32.totalorder %v93_v56, %v3033_v51  ;;  %vm187_vm3 = vcmp.eq.s32.totalorder %v93_v56, %v3036_v54  ;;  %vm190_vm10 = vcmp.eq.s32.totalorder %v99_v55, %v3033_v51 }
  0x9a   :  { %vm2012_vm5 = vmpackc.low %vm191_vm1, %vm189_vm0 }
  0x9b   :  { %vm2010_vm6 = vmpackc.low %vm186_vm2, %vm184_vm4 }
  0x9c   :  { %v105_v57 = vpop.permute.xlu1 %104  ;;  %v102_v58 = vpop.permute.xlu0 %101  ;;  %vm2008_vm8 = vmpackc.low %vm187_vm3, %vm185_vm7 }
  0x9d   :  { %2009 = vmatprep.mubr.msk.bf16.mxu0 %vm2008_vm8, %v2805_v59  ;;  %vm195_vm11 = vcmp.eq.s32.totalorder %v105_v57, %v3036_v54  ;;  %vm193_vm12 = vcmp.eq.s32.totalorder %v102_v58, %v3036_v54  ;;  %vm2014_vm13 = vmpackc.low %vm190_vm10, %vm188_vm9  ;;  %vm194_vm15 = vcmp.eq.s32.totalorder %v105_v57, %v3033_v51  ;;  %vm192_vm0 = vcmp.eq.s32.totalorder %v102_v58, %v3033_v51  ;;  %v2660_v57 = vld [vmem:[%s3696_s6 + $0x10] ss:$8 sps:$4 sm:$0xff]  }
  0x9e   :  { %2011 = vmatmul.mubr.msk.bf16.vlgmr.msra.gmra.mrb[0].mxu0 %vm2010_vm6, %v2805_v59  ;;  %vm2016_vm14 = vmpackc.low %vm195_vm11, %vm193_vm12 }
  0x9f   :  { %2013 = vmatprep.mubr.msk.bf16.mxu0 %vm2012_vm5, %v2805_v59  ;;  %vm2018_vm3 = vmpackc.low %vm194_vm15, %vm192_vm0 }
  0xa0   :  { %v111_v60 = vpop.permute.xlu1 %110  ;;  %v108_v61 = vpop.permute.xlu0 %107 }
  0xa1   :  { %vm199_vm1 = vcmp.eq.s32.totalorder %v111_v60, %v3036_v54  ;;  %vm197_vm2 = vcmp.eq.s32.totalorder %v108_v61, %v3036_v54  ;;  %vm198_vm5 = vcmp.eq.s32.totalorder %v111_v60, %v3033_v51  ;;  %vm196_vm6 = vcmp.eq.s32.totalorder %v108_v61, %v3033_v51  ;;  %v2665_v61 = vld [vmem:[%s3696_s6 + $0x24] ss:$8 sps:$4 sm:$0xff]  }
  0xa2   :  { %vm2020_vm4 = vmpackc.low %vm199_vm1, %vm197_vm2 }
  0xa3   :  { %vm2022_vm9 = vmpackc.low %vm198_vm5, %vm196_vm6 }
  0xa4   :  { %v117_v62 = vpop.permute.xlu1 %116  ;;  %v114_v63 = vpop.permute.xlu0 %113 }
  0xa5   :  { %vm203_vm7 = vcmp.eq.s32.totalorder %v117_v62, %v3036_v54  ;;  %vm201_vm8 = vcmp.eq.s32.totalorder %v114_v63, %v3036_v54  ;;  %vm200_vm5 = vcmp.eq.s32.totalorder %v114_v63, %v3033_v51 }
  0xa6   :  { %2015 = vmatmul.mubr.msk.bf16.gmra.mrb[4].mxu0 %vm2014_vm13, %v2805_v59  ;;  %vm2024_vm10 = vmpackc.low %vm203_vm7, %vm201_vm8 }
  0xa7   :  { %2017 = vmatprep.mubr.msk.bf16.mxu0 %vm2016_vm14, %v2805_v59 }
  0xa8   :  { %v3053_v1 = vpop.permute.xlu1 %122  ;;  %v3055_v2 = vpop.permute.xlu0 %119 }
  0xa9   :  { %vm207_vm6 = vcmp.eq.s32.totalorder %v3053_v1, %v3036_v54  ;;  %vm205_vm7 = vcmp.eq.s32.totalorder %v3055_v2, %v3036_v54 }
  0xac   :  { %v3061_v3 = vpop.permute.xlu1 %128  ;;  %v3063_v4 = vpop.permute.xlu0 %125 }
  0xae   :  { %2019 = vmatmul.mubr.msk.bf16.gmra.mrb[8].mxu0 %vm2018_vm3, %v2805_v59 }
  0xaf   :  { %2021 = vmatprep.mubr.msk.bf16.mxu0 %vm2020_vm4, %v2805_v59  ;;  %vm202_vm4 = vcmp.eq.s32.totalorder %v117_v62, %v3033_v51 }
  0xb0   :  { %v3067_v5 = vpop.permute.xlu1 %134  ;;  %v3069_v6 = vpop.permute.xlu0 %131 }
  0xb4   :  { %v165_v7 = vpop.permute.xlu1 %164  ;;  %v162_v8 = vpop.permute.xlu0 %161 }
  0xb5   :  { %vm234_vm11 = vcmp.eq.s32.totalorder %v165_v7, %v3033_v51  ;;  %vm232_vm12 = vcmp.eq.s32.totalorder %v162_v8, %v3033_v51  ;;  %vm233_vm13 = vcmp.eq.s32.totalorder %v162_v8, %v3036_v54  ;;  %vm235_vm14 = vcmp.eq.s32.totalorder %v165_v7, %v3036_v54  ;;  %v2666_v7 = vld [vmem:[%s3696_s6 + $0x30] ss:$8 sps:$4 sm:$0xff]  }
  0xb6   :  { %vm2058_vm15 = vmpackc.low %vm234_vm11, %vm232_vm12  ;;  %2023 = vmatmul.mubr.msk.bf16.gmra.mrb[12].mxu0 %vm2022_vm9, %v2805_v59 }
  0xb7   :  { %vm2056_vm0 = vmpackc.low %vm235_vm14, %vm233_vm13  ;;  %2025 = vmatprep.mubr.msk.bf16.mxu0 %vm2024_vm10, %v2805_v59 }
  0xb8   :  { %2057 = vmatprep.mubr.msk.bf16.mxu1 %vm2056_vm0, %v2805_v59  ;;  %v171_v10 = vpop.permute.xlu1 %170  ;;  %v168_v11 = vpop.permute.xlu0 %167  ;;  %vm2026_vm10 = vmpackc.low %vm202_vm4, %vm200_vm5  ;;  %vm206_vm0 = vcmp.eq.s32.totalorder %v3053_v1, %v3033_v51  ;;  %v2663_v1 = vld [vmem:[%s3696_s6 + $0x20] ss:$8 sps:$4 sm:$0xff]  }
  0xb9   :  { %vm239_vm1 = vcmp.eq.s32.totalorder %v171_v10, %v3036_v54  ;;  %2059 = vmatmul.mubr.msk.bf16.vlgmr.msra.gmra.mrb[0].mxu1 %vm2058_vm15, %v2805_v59  ;;  %vm237_vm2 = vcmp.eq.s32.totalorder %v168_v11, %v3036_v54  ;;  %vm238_vm8 = vcmp.eq.s32.totalorder %v171_v10, %v3033_v51  ;;  %vm236_vm9 = vcmp.eq.s32.totalorder %v168_v11, %v3033_v51  ;;  %vm2028_vm13 = vmpackc.low %vm207_vm6, %vm205_vm7 }
  0xba   :  { %vm2060_vm3 = vmpackc.low %vm239_vm1, %vm237_vm2  ;;  %2418 = vmatpush3.bf16.msra.mxu1 %v3029_v49  ;;  %vm204_vm1 = vcmp.eq.s32.totalorder %v3055_v2, %v3033_v51  ;;  %vm211_vm2 = vcmp.eq.s32.totalorder %v3061_v3, %v3036_v54 }
  0xbb   :  { %2061 = vmatprep.mubr.msk.bf16.mxu1 %vm2060_vm3, %v2805_v59  ;;  %2419 = vmatprep.subr.bf16.mxu1 %v2650_v9  ;;  %vm2062_vm14 = vmpackc.low %vm238_vm8, %vm236_vm9  ;;  %vm209_vm3 = vcmp.eq.s32.totalorder %v3063_v4, %v3036_v54 }
  0xbc   :  { %v177_v13 = vpop.permute.xlu1 %176  ;;  %v174_v14 = vpop.permute.xlu0 %173  ;;  %vm2030_vm6 = vmpackc.low %vm206_vm0, %vm204_vm1 }
  0xbd   :  { %vm243_vm11 = vcmp.eq.s32.totalorder %v177_v13, %v3036_v54  ;;  %vm241_vm12 = vcmp.eq.s32.totalorder %v174_v14, %v3036_v54  ;;  %vm242_vm4 = vcmp.eq.s32.totalorder %v177_v13, %v3033_v51  ;;  %vm240_vm5 = vcmp.eq.s32.totalorder %v174_v14, %v3033_v51  ;;  %vm2032_vm9 = vmpackc.low %vm211_vm2, %vm209_vm3 }
  0xbe   :  { %2420 = vmatpush3.bf16.msra.mxu1 %v2650_v9  ;;  %2027 = vmatmul.mubr.msk.bf16.gmra.mrb[16].mxu0 %vm2026_vm10, %v2805_v59  ;;  %vm2064_vm15 = vmpackc.low %vm243_vm11, %vm241_vm12  ;;  %vm210_vm12 = vcmp.eq.s32.totalorder %v3061_v3, %v3033_v51  ;;  %v2668_v3 = vld [vmem:[%s3696_s6 + $0x34] ss:$8 sps:$4 sm:$0xff]  }
  0xbf   :  { %2421 = vmatprep.subr.bf16.mxu1 %v2651_v12  ;;  %2029 = vmatprep.mubr.msk.bf16.mxu0 %vm2028_vm13, %v2805_v59  ;;  %vm2066_vm10 = vmpackc.low %vm242_vm4, %vm240_vm5  ;;  %vm208_vm13 = vcmp.eq.s32.totalorder %v3063_v4, %v3033_v51  ;;  %vm214_vm5 = vcmp.eq.s32.totalorder %v3067_v5, %v3033_v51 }
  0xc0   :  { %v183_v16 = vpop.permute.xlu1 %182  ;;  %v180_v17 = vpop.permute.xlu0 %179  ;;  %vm2034_vm2 = vmpackc.low %vm210_vm12, %vm208_vm13 }
  0xc1   :  { %2063 = vmatmul.mubr.msk.bf16.gmra.mrb[4].mxu1 %vm2062_vm14, %v2805_v59  ;;  %vm247_vm7 = vcmp.eq.s32.totalorder %v183_v16, %v3036_v54  ;;  %vm245_vm8 = vcmp.eq.s32.totalorder %v180_v17, %v3036_v54  ;;  %vm215_vm14 = vcmp.eq.s32.totalorder %v3067_v5, %v3036_v54  ;;  %vm246_vm0 = vcmp.eq.s32.totalorder %v183_v16, %v3033_v51 }
  0xc2   :  { %2065 = vmatprep.mubr.msk.bf16.mxu1 %vm2064_vm15, %v2805_v59  ;;  %2422 = vmatpush3.bf16.msra.mxu1 %v2651_v12  ;;  %vm2068_vm11 = vmpackc.low %vm247_vm7, %vm245_vm8  ;;  %vm213_vm15 = vcmp.eq.s32.totalorder %v3069_v6, %v3036_v54  ;;  %vm244_vm1 = vcmp.eq.s32.totalorder %v180_v17, %v3033_v51 }
  0xc3   :  { %2423 = vmatprep.subr.bf16.mxu1 %v2652_v15  ;;  %vm2036_vm3 = vmpackc.low %vm215_vm14, %vm213_vm15 }
  0xc4   :  { %vm2070_vm4 = vmpackc.low %vm246_vm0, %vm244_vm1  ;;  %v141_v18 = vpop.permute.xlu1 %140  ;;  %v138_v19 = vpop.permute.xlu0 %137 }
  0xc5   :  { %vm219_vm7 = vcmp.eq.s32.totalorder %v141_v18, %v3036_v54  ;;  %vm217_vm8 = vcmp.eq.s32.totalorder %v138_v19, %v3036_v54  ;;  %vm216_vm12 = vcmp.eq.s32.totalorder %v138_v19, %v3033_v51 }
  0xc6   :  { %2424 = vmatpush3.bf16.msra.mxu1 %v2652_v15  ;;  %2031 = vmatmul.mubr.msk.bf16.gmra.mrb[20].mxu0 %vm2030_vm6, %v2805_v59  ;;  %vm212_vm6 = vcmp.eq.s32.totalorder %v3069_v6, %v3033_v51 }
  0xc7   :  { %2033 = vmatprep.mubr.msk.bf16.mxu0 %vm2032_vm9, %v2805_v59  ;;  %vm2038_vm9 = vmpackc.low %vm214_vm5, %vm212_vm6  ;;  %2425 = vmatprep.subr.bf16.mxu1 %v2653_v26 }
  0xc8   :  { %v147_v20 = vpop.permute.xlu1 %146  ;;  %v144_v21 = vpop.permute.xlu0 %143 }
  0xc9   :  { %2067 = vmatmul.mubr.msk.bf16.gmra.mrb[8].mxu1 %vm2066_vm10, %v2805_v59  ;;  %vm2040_vm10 = vmpackc.low %vm219_vm7, %vm217_vm8  ;;  %vm223_vm13 = vcmp.eq.s32.totalorder %v147_v20, %v3036_v54  ;;  %vm221_vm14 = vcmp.eq.s32.totalorder %v144_v21, %v3036_v54  ;;  %vm222_vm1 = vcmp.eq.s32.totalorder %v147_v20, %v3033_v51 }
  0xca   :  { %2069 = vmatprep.mubr.msk.bf16.mxu1 %vm2068_vm11, %v2805_v59  ;;  %vm218_vm11 = vcmp.eq.s32.totalorder %v141_v18, %v3033_v51  ;;  %vm2044_vm0 = vmpackc.low %vm223_vm13, %vm221_vm14  ;;  %2426 = vmatpush3.bf16.msra.mxu1 %v2653_v26 }
  0xcb   :  { %vm2042_vm15 = vmpackc.low %vm218_vm11, %vm216_vm12  ;;  %2427 = vmatprep.subr.bf16.mxu1 %v2654_v27 }
  0xcc   :  { %v153_v22 = vpop.permute.xlu1 %152  ;;  %v150_v23 = vpop.permute.xlu0 %149 }
  0xcd   :  { %vm226_vm7 = vcmp.eq.s32.totalorder %v153_v22, %v3033_v51  ;;  %vm224_vm8 = vcmp.eq.s32.totalorder %v150_v23, %v3033_v51 }
  0xce   :  { %2035 = vmatmul.mubr.msk.bf16.gmra.mrb[24].mxu0 %vm2034_vm2, %v2805_v59  ;;  %vm220_vm2 = vcmp.eq.s32.totalorder %v144_v21, %v3033_v51  ;;  %vm2050_vm11 = vmpackc.low %vm226_vm7, %vm224_vm8  ;;  %2428 = vmatpush3.bf16.msra.mxu1 %v2654_v27 }
  0xcf   :  { %2037 = vmatprep.mubr.msk.bf16.mxu0 %vm2036_vm3, %v2805_v59  ;;  %vm227_vm3 = vcmp.eq.s32.totalorder %v153_v22, %v3036_v54  ;;  %vm2046_vm5 = vmpackc.low %vm222_vm1, %vm220_vm2  ;;  %2429 = vmatprep.subr.bf16.mxu1 %v2655_v28  ;;  %vm3702_vm1 = vcmask 1040384  }
  0xd0   :  { %v159_v24 = vpop.permute.xlu1 %158  ;;  %v156_v25 = vpop.permute.xlu0 %155 }
  0xd1   :  { %2071 = vmatmul.mubr.msk.bf16.gmra.mrb[12].mxu1 %vm2070_vm4, %v2805_v59  ;;  %vm225_vm4 = vcmp.eq.s32.totalorder %v150_v23, %v3036_v54  ;;  %vm230_vm13 = vcmp.eq.s32.totalorder %v159_v24, %v3033_v51  ;;  %vm228_vm14 = vcmp.eq.s32.totalorder %v156_v25, %v3033_v51 }
  0xd2   :  { %vm2048_vm6 = vmpackc.low %vm227_vm3, %vm225_vm4  ;;  %2430 = vmatpush3.bf16.msra.mxu1 %v2655_v28  ;;  %vm3703_vm3 = vmmov 0  }
  0xd3   :  { %2431 = vmatprep.subr.bf16.mxu1 %v2656_v31 }
  0xd6   :  { %2039 = vmatmul.mubr.msk.bf16.gmra.mrb[28].mxu0 %vm2038_vm9, %v2805_v59  ;;  %vm231_vm9 = vcmp.eq.s32.totalorder %v159_v24, %v3036_v54  ;;  %2432 = vmatpush3.bf16.msra.mxu1 %v2656_v31 }
  0xd7   :  { %2041 = vmatprep.mubr.msk.bf16.mxu0 %vm2040_vm10, %v2805_v59  ;;  %vm229_vm10 = vcmp.eq.s32.totalorder %v156_v25, %v3036_v54  ;;  %1089 = vmatprep.subr.bf16.mxu1 %v2659_v36  ;;  %v2662_v54 = vld [vmem:[%s3696_s6 + $0x14] ss:$8 sps:$4 sm:$0xff]  }
  0xd8   :  { %vm2052_vm12 = vmpackc.low %vm231_vm9, %vm229_vm10 }
  0xde   :  { %2043 = vmatmul.mubr.msk.bf16.gmra.mrb[32].mxu0 %vm2042_vm15, %v2805_v59  ;;  %vm2054_vm15 = vmpackc.low %vm230_vm13, %vm228_vm14 }
  0xdf   :  { %2045 = vmatprep.mubr.msk.bf16.mxu0 %vm2044_vm0, %v2805_v59  ;;  %vm1465_vm0 = vcmp.eq.s32.totalorder %v1463_v29, %v1464_v30 }
  0xe0   :  { %v1466_v32 = vsel %vm1465_vm0, %v3033_v51, 128 }
  0xe1   :  { %v1468_v33 = vsel %vm3702_vm1, %v1466_v32, 2147483647 }
  0xe2   :  { %v1470_v34 = vshra.s32 %v1468_v33, 16  ;;  %v1469_v4 = vand.u32 65535, %v1468_v33 }
  0xe4   :  { %v1472_v35 = vcvt.s32.f32 %v1470_v34  ;;  %v1471_v13 = vcvt.s32.f32 %v1469_v4 }
  0xe6   :  { %2047 = vmatmul.mubr.msk.bf16.gmra.mrb[36].mxu0 %vm2046_vm5, %v2805_v59  ;;  %1473 = vmin.xlane.f32.xlu0 %v1472_v35 }
  0xe7   :  { %2049 = vmatprep.mubr.msk.bf16.mxu0 %vm2048_vm6, %v2805_v59 }
  0xee   :  { %2051 = vmatmul.mubr.msk.bf16.gmra.mrb[40].mxu0 %vm2050_vm11, %v2805_v59 }
  0xef   :  { %2053 = vmatprep.mubr.msk.bf16.mxu0 %vm2052_vm12, %v2805_v59 }
  0xf6   :  { %2055 = vmatmul.mubr.msk.bf16.gmra.mrb[44].mxu0 %vm2054_vm15, %v2805_v59 }
 0x171   :  { %v2243_v37 = vpop.f32.mrb[0].mxu0 }
 0x172   :  { %v2244_v38 = vpop.f32.mrb[1].mxu0 }
 0x173   :  { %v2245_v39 = vadd.f32 %v2244_v38, %v2243_v37  ;;  %v2246_v40 = vpop.f32.mrb[2].mxu0  ;;  %v3197_v18 = vpop.xlane.xlu0 %1473 }
 0x174   :  { %v2247_v41 = vpop.f32.mrb[3].mxu0  ;;  %vm1475_vm2 = vcmp.eq.f32.partialorder %v1472_v35, %v3197_v18 }
 0x175   :  { %v2248_v42 = vadd.f32 %v2247_v41, %v2246_v40  ;;  %v1476_v21 = vsel %vm1475_vm2, %v1471_v13, inf }
 0x176   :  { %1477 = vmin.xlane.f32.xlu1 %v1476_v21 }
 0x177   :  { %v697_v43 = vpack.c.bf16 %v2248_v42, %v2245_v39 }
 0x179   :  { %v2249_v44 = vpop.f32.mrb[4].mxu0  ;;  %2433 = vmatprep.mubr.bf16.mxu1 %v697_v43 }
 0x17a   :  { %v2250_v45 = vpop.f32.mrb[5].mxu0 }
 0x17b   :  { %v2251_v46 = vadd.f32 %v2250_v45, %v2249_v44  ;;  %v2252_v47 = vpop.f32.mrb[6].mxu0 }
 0x17c   :  { %v2253_v48 = vpop.f32.mrb[7].mxu0 }
 0x17d   :  { %v2254_v49 = vadd.f32 %v2253_v48, %v2252_v47 }
 0x17f   :  { %v698_v53 = vpack.c.bf16 %v2254_v49, %v2251_v46 }
 0x181   :  { %v2255_v55 = vpop.f32.mrb[8].mxu0  ;;  %2434 = vmatmul.mubr.bf16.vlgmr.msra.gmra.mrb[16].mxu1 %v698_v53 }
 0x182   :  { %v2256_v56 = vpop.f32.mrb[9].mxu0  ;;  %1090 = vmatpush1.bf16.msra.mxu1 %v2657_v52 }
 0x183   :  { %v2257_v58 = vadd.f32 %v2256_v56, %v2255_v55  ;;  %v2258_v60 = vpop.f32.mrb[10].mxu0  ;;  %1091 = vmatprep.subr.bf16.mxu1 %v2662_v54 }
 0x184   :  { %v2259_v62 = vpop.f32.mrb[11].mxu0 }
 0x185   :  { %v2260_v63 = vadd.f32 %v2259_v62, %v2258_v60 }
 0x186   :  { %1092 = vmatpush1.bf16.msra.mxu1 %v2660_v57 }
 0x187   :  { %v699_v2 = vpack.c.bf16 %v2260_v63, %v2257_v58  ;;  %1093 = vmatprep.subr.bf16.mxu1 %v2665_v61 }
 0x189   :  { %v2261_v5 = vpop.f32.mrb[12].mxu0  ;;  %2437 = vmatprep.mubr.bf16.mxu1 %v699_v2 }
 0x18a   :  { %v2262_v6 = vpop.f32.mrb[13].mxu0  ;;  %1094 = vmatpush1.bf16.msra.mxu1 %v2663_v1 }
 0x18b   :  { %v2263_v8 = vadd.f32 %v2262_v6, %v2261_v5  ;;  %v2264_v9 = vpop.f32.mrb[14].mxu0  ;;  %1095 = vmatprep.subr.bf16.mxu1 %v2668_v3 }
 0x18c   :  { %v2315_v10 = vpop.f32.mrb[0].mxu1  ;;  %v2265_v11 = vpop.f32.mrb[15].mxu0 }
 0x18d   :  { %v2316_v12 = vpop.f32.mrb[1].mxu1  ;;  %v2266_v14 = vadd.f32 %v2265_v11, %v2264_v9 }
 0x18e   :  { %v3195_v15 = vadd.f32 %v2316_v12, %v2315_v10  ;;  %v2318_v16 = vpop.f32.mrb[2].mxu1  ;;  %1096 = vmatpush1.bf16.msra.mxu1 %v2666_v7 }
 0x18f   :  { %v2319_v17 = vpop.f32.mrb[3].mxu1  ;;  %v700_v19 = vpack.c.bf16 %v2266_v14, %v2263_v8 }
 0x190   :  { %v3199_v20 = vadd.f32 %v2319_v17, %v2318_v16 }
 0x191   :  { %v2267_v23 = vpop.f32.mrb[16].mxu0  ;;  %2438 = vmatmul.mubr.bf16.gmra.mrb[20].mxu1 %v700_v19 }
 0x192   :  { %v709_v22 = vpack.c.bf16 %v3199_v20, %v3195_v15  ;;  %v2268_v24 = vpop.f32.mrb[17].mxu0  ;;  %v2672_v15 = vld [vmem:[%s3696_s6 + $0x50] ss:$8 sps:$4 sm:$0xff]   ;;  %v2677_v20 = vld [vmem:[%s3696_s6 + $0x64] ss:$8 sps:$4 sm:$0xff]  }
 0x193   :  { %v2269_v25 = vadd.f32 %v2268_v24, %v2267_v23  ;;  %v2270_v26 = vpop.f32.mrb[18].mxu0 }
 0x194   :  { %v2321_v27 = vpop.f32.mrb[4].mxu1  ;;  %v2271_v28 = vpop.f32.mrb[19].mxu0 }
 0x195   :  { %v2322_v29 = vpop.f32.mrb[5].mxu1  ;;  %v2272_v31 = vadd.f32 %v2271_v28, %v2270_v26 }
 0x196   :  { %v3204_v32 = vadd.f32 %v2322_v29, %v2321_v27  ;;  %v2324_v33 = vpop.f32.mrb[6].mxu1 }
 0x197   :  { %v2325_v34 = vpop.f32.mrb[7].mxu1  ;;  %v701_v36 = vpack.c.bf16 %v2272_v31, %v2269_v25 }
 0x198   :  { %v3206_v35 = vadd.f32 %v2325_v34, %v2324_v33 }
 0x199   :  { %v2273_v38 = vpop.f32.mrb[20].mxu0  ;;  %2441 = vmatprep.mubr.bf16.mxu1 %v701_v36 }
 0x19a   :  { %v710_v37 = vpack.c.bf16 %v3206_v35, %v3204_v32  ;;  %v2274_v39 = vpop.f32.mrb[21].mxu0  ;;  %v2680_v32 = vld [vmem:[%s3696_s6 + $0x74] ss:$8 sps:$4 sm:$0xff]   ;;  %v2678_v35 = vld [vmem:[%s3696_s6 + $0x70] ss:$8 sps:$4 sm:$0xff]  }
 0x19b   :  { %v2275_v40 = vadd.f32 %v2274_v39, %v2273_v38  ;;  %v2276_v41 = vpop.f32.mrb[22].mxu0 }
 0x19c   :  { %v2327_v42 = vpop.f32.mrb[8].mxu1  ;;  %v2277_v43 = vpop.f32.mrb[23].mxu0 }
 0x19d   :  { %v2328_v44 = vpop.f32.mrb[9].mxu1  ;;  %v2278_v45 = vadd.f32 %v2277_v43, %v2276_v41 }
 0x19e   :  { %v3210_v46 = vadd.f32 %v2328_v44, %v2327_v42  ;;  %v2330_v47 = vpop.f32.mrb[10].mxu1 }
 0x19f   :  { %v2331_v48 = vpop.f32.mrb[11].mxu1  ;;  %v702_v49 = vpack.c.bf16 %v2278_v45, %v2275_v40 }
 0x1a0   :  { %v3212_v52 = vadd.f32 %v2331_v48, %v2330_v47 }
 0x1a1   :  { %v2279_v54 = vpop.f32.mrb[24].mxu0  ;;  %2442 = vmatmul.mubr.bf16.gmra.mrb[24].mxu1 %v702_v49 }
 0x1a2   :  { %v711_v53 = vpack.c.bf16 %v3212_v52, %v3210_v46  ;;  %v2280_v55 = vpop.f32.mrb[25].mxu0  ;;  %v1480_v46 = vcvt.f32.s32 %v3197_v18  ;;  %v3261_v18 = vld [vmem:[%s3695_s5] ss:$0 sm:$0xff] }
 0x1a3   :  { %v2281_v56 = vadd.f32 %v2280_v55, %v2279_v54  ;;  %v2282_v57 = vpop.f32.mrb[26].mxu0  ;;  %v2671_v54 = vld [vmem:[%s3696_s6 + $0x44] ss:$8 sps:$4 sm:$0xff]   ;;  %v2669_v55 = vld [vmem:[%s3696_s6 + $0x40] ss:$8 sps:$4 sm:$0xff]  }
 0x1a4   :  { %v2333_v58 = vpop.f32.mrb[12].mxu1  ;;  %v2283_v60 = vpop.f32.mrb[27].mxu0  ;;  %1097 = vmatprep.subr.bf16.mxu1 %v2671_v54  ;;  %v1481_v52 = vshll.u32 %v1480_v46, 16 }
 0x1a5   :  { %v2334_v61 = vpop.f32.mrb[13].mxu1  ;;  %v2284_v62 = vadd.f32 %v2283_v60, %v2282_v57  ;;  %1098 = vmatpush1.bf16.msra.mxu1 %v2669_v55 }
 0x1a6   :  { %v3216_v63 = vadd.f32 %v2334_v61, %v2333_v58  ;;  %v2336_v1 = vpop.f32.mrb[14].mxu1 }
 0x1a7   :  { %v2337_v2 = vpop.f32.mrb[15].mxu1  ;;  %v703_v3 = vpack.c.bf16 %v2284_v62, %v2281_v56  ;;  %v2674_v56 = vld [vmem:[%s3696_s6 + $0x54] ss:$8 sps:$4 sm:$0xff]  }
 0x1a8   :  { %v2338_v4 = vadd.f32 %v2337_v2, %v2336_v1  ;;  %1099 = vmatprep.subr.bf16.mxu1 %v2674_v56 }
 0x1a9   :  { %v2285_v6 = vpop.f32.mrb[28].mxu0  ;;  %2445 = vmatprep.mubr.bf16.mxu1 %v703_v3  ;;  %1100 = vmatpush1.bf16.msra.mxu1 %v2672_v15 }
 0x1aa   :  { %v712_v5 = vpack.c.bf16 %v2338_v4, %v3216_v63  ;;  %v2286_v7 = vpop.f32.mrb[29].mxu0  ;;  %1101 = vmatprep.subr.bf16.mxu1 %v2677_v20 }
 0x1ab   :  { %v2287_v8 = vadd.f32 %v2286_v7, %v2285_v6  ;;  %v2288_v9 = vpop.f32.mrb[30].mxu0 }
 0x1ac   :  { %v2289_v10 = vpop.f32.mrb[31].mxu0 }
 0x1ad   :  { %v2290_v11 = vadd.f32 %v2289_v10, %v2288_v9 }
 0x1af   :  { %v704_v12 = vpack.c.bf16 %v2290_v11, %v2287_v8 }
 0x1b1   :  { %v2291_v13 = vpop.f32.mrb[32].mxu0  ;;  %2446 = vmatmul.mubr.bf16.gmra.mrb[28].mxu1 %v704_v12 }
 0x1b2   :  { %v2292_v14 = vpop.f32.mrb[33].mxu0 }
 0x1b3   :  { %v2293_v16 = vadd.f32 %v2292_v14, %v2291_v13  ;;  %v2294_v17 = vpop.f32.mrb[34].mxu0 }
 0x1b4   :  { %v2295_v19 = vpop.f32.mrb[35].mxu0 }
 0x1b5   :  { %v2296_v21 = vadd.f32 %v2295_v19, %v2294_v17 }
 0x1b7   :  { %v705_v23 = vpack.c.bf16 %v2296_v21, %v2293_v16 }
 0x1b9   :  { %v2297_v24 = vpop.f32.mrb[36].mxu0  ;;  %2449 = vmatprep.mubr.bf16.mxu1 %v705_v23 }
 0x1ba   :  { %v2298_v25 = vpop.f32.mrb[37].mxu0 }
 0x1bb   :  { %v2299_v26 = vadd.f32 %v2298_v25, %v2297_v24  ;;  %v2300_v27 = vpop.f32.mrb[38].mxu0 }
 0x1bc   :  { %v2301_v28 = vpop.f32.mrb[39].mxu0 }
 0x1bd   :  { %v2302_v29 = vadd.f32 %v2301_v28, %v2300_v27 }
 0x1bf   :  { %v706_v31 = vpack.c.bf16 %v2302_v29, %v2299_v26 }
 0x1c1   :  { %v2303_v33 = vpop.f32.mrb[40].mxu0  ;;  %2450 = vmatmul.mubr.bf16.gmra.mrb[32].mxu1 %v706_v31 }
 0x1c2   :  { %v2304_v34 = vpop.f32.mrb[41].mxu0 }
 0x1c3   :  { %v2305_v36 = vadd.f32 %v2304_v34, %v2303_v33  ;;  %v2306_v38 = vpop.f32.mrb[42].mxu0 }
 0x1c4   :  { %v2307_v39 = vpop.f32.mrb[43].mxu0 }
 0x1c5   :  { %v2308_v40 = vadd.f32 %v2307_v39, %v2306_v38 }
 0x1c7   :  { %v707_v41 = vpack.c.bf16 %v2308_v40, %v2305_v36 }
 0x1c9   :  { %v2309_v42 = vpop.f32.mrb[44].mxu0  ;;  %2453 = vmatprep.mubr.bf16.mxu1 %v707_v41 }
 0x1ca   :  { %v2310_v43 = vpop.f32.mrb[45].mxu0 }
 0x1cb   :  { %v2311_v44 = vadd.f32 %v2310_v43, %v2309_v42  ;;  %v2312_v45 = vpop.f32.mrb[46].mxu0 }
 0x1cc   :  { %v2313_v47 = vpop.f32.mrb[47].mxu0 }
 0x1cd   :  { %v2314_v48 = vadd.f32 %v2313_v47, %v2312_v45 }
 0x1cf   :  { %v708_v49 = vpack.c.bf16 %v2314_v48, %v2311_v44 }
 0x1d1   :  { %2454 = vmatmul.mubr.bf16.gmra.mrb[36].mxu1 %v708_v49 }
 0x1d2   :  { %2457 = vmatprep.mubr.bf16.mxu1 %v709_v22  ;;  %v2675_v22 = vld [vmem:[%s3696_s6 + $0x60] ss:$8 sps:$4 sm:$0xff]   ;;  %s1912_s6 = sshll.u32 %s2808_s19, 4  ;;  %s1913_s6 = int_to_ptr.vmem [resolvable:$true] %s1912_s6 }
 0x1d3   :  { %1102 = vmatpush1.bf16.msra.mxu1 %v2675_v22  ;;  %s2775_s20 = scalar_lea.vmem %s1913_s6, 8192  ;;  %p2780_p9 = scmp.lt.s32.totalorder %s1913_s6, %s1913_s6 }
 0x1d4   :  { %1103 = vmatprep.subr.bf16.mxu1 %v2680_v32  ;;  %p2776_p8 = scmp.ne.s32.totalorder %s1913_s6, %s2775_s20  ;;  %p2781_p10 = scmp.lt.s32.totalorder %s2775_s20, %s2775_s20 }
 0x1d6   :  { %p2782_p11 = por %p2781_p10, %p2780_p9 }
 0x1d7   :  { %1104 = vmatpush1.bf16.msra.mxu1 %v2678_v35 }
 0x1d8   :  { %p2783_p12 = pnand %p2782_p11, %p2776_p8 }
 0x1d9   :  { %2458 = vmatmul.mubr.bf16.gmra.mrb[40].mxu1 %v710_v37  ;;  %v2806_v37 = vmov 0.0  }
 0x1da   :  { %2461 = vmatprep.mubr.bf16.mxu1 %v711_v53  ;;  %2465 = vmatprep.subr.bf16.mxu0 %v2806_v37 }
 0x1db   :  { %2505 = vmatprep.subr.bf16.mxu1 %v2806_v37  ;;  %2481 = vmatprep.mubr.msk.bf16.mxu0 %vm3703_vm3, %v2806_v37 }
 0x1e1   :  { %2462 = vmatmul.mubr.bf16.gmra.mrb[44].mxu1 %v712_v5 }
 0x1e2   :  { %1121 = vmatprep.mubr.bf16.mxu1 %v2804_v0 }
 0x203   :  { %v1478_v53 = vpop.xlane.xlu1 %1477 }
 0x204   :  { %v1479_v57 = vcvt.f32.s32 %v1478_v53 }
 0x206   :  { %v1482_v58 = vadd.s32 %v1481_v52, %v1479_v57 }
 0x208   :  { %v1483_v60 = vrot.slane %v1482_v58, 4 }
 0x20a   :  { %vm1484_vm4 = vcmp.lt.s32.totalorder %v1482_v58, %v1483_v60 }
 0x20b   :  { %v1485_v61 = vsel %vm1484_vm4, %v1482_v58, %v1483_v60 }
 0x20c   :  { %v1486_v62 = vrot.slane %v1485_v61, 2 }
 0x20e   :  { %vm1487_vm5 = vcmp.lt.s32.totalorder %v1485_v61, %v1486_v62 }
 0x20f   :  { %v1488_v63 = vsel %vm1487_vm5, %v1485_v61, %v1486_v62 }
 0x210   :  { %v1489_v1 = vrot.slane %v1488_v63, 1 }
 0x212   :  { %vm1490_vm6 = vcmp.lt.s32.totalorder %v1488_v63, %v1489_v1 }
 0x213   :  { %v1491_v2 = vsel %vm1490_vm6, %v1488_v63, %v1489_v1 }
 0x214   :  { %2601 = vpush %v1491_v2 }
 0x254   :  { %v2435_v3 = vpop.f32.mrb[16].mxu1 }
 0x255   :  { %v827_v4 = vadd.f32 %v2435_v3, %v3261_v18  ;;  %v818_v5 = vpop.f32.mrb[17].mxu1 }
 0x256   :  { %v819_v6 = vadd.f32 %v3261_v18, %v818_v5  ;;  %v2436_v7 = vpop.f32.mrb[18].mxu1 }
 0x257   :  { %2681 = vtanh.f32 %v827_v4  ;;  %v830_v8 = vadd.f32 %v2436_v7, %v3261_v18  ;;  %v821_v9 = vpop.f32.mrb[19].mxu1 }
 0x258   :  { %2683 = vtanh.f32 %v819_v6  ;;  %v822_v10 = vadd.f32 %v3261_v18, %v821_v9 }
 0x259   :  { %2685 = vtanh.f32 %v830_v8 }
 0x25a   :  { %2687 = vtanh.f32 %v822_v10 }
 0x261   :  { %v2682_v11 = vpop.eup %2681 }
 0x262   :  { %v2684_v12 = vpop.eup %2683 }
 0x263   :  { %v2686_v13 = vpop.eup %2685 }
 0x264   :  { %v2688_v14 = vpop.eup %2687  ;;  %v2439_v16 = vpop.f32.mrb[20].mxu1  ;;  %v978_v17 = vpack.c.bf16 %v2686_v13, %v2682_v11  ;;  %v3302_v13 = vld [vmem:[%s3697_s7] sm:$0x1]  ;;  %s2602_s7 = spop %2601 }
 0x265   :  { %v843_v19 = vadd.f32 %v2439_v16, %v3261_v18  ;;  %v834_v21 = vpop.f32.mrb[21].mxu1  ;;  %v977_v23 = vpack.c.bf16 %v2688_v14, %v2684_v12 }
 0x266   :  { %v835_v24 = vadd.f32 %v3261_v18, %v834_v21  ;;  %v2440_v25 = vpop.f32.mrb[22].mxu1 }
 0x267   :  { %2689 = vtanh.f32 %v843_v19  ;;  %v846_v26 = vadd.f32 %v2440_v25, %v3261_v18  ;;  %v837_v27 = vpop.f32.mrb[23].mxu1  ;;  %1122 = vmatmul.mubr.bf16.vlgmr.msra.gmra.mrb[48].mxu1 %v977_v23  ;;  %2466 = vmatpush3.bf16.xpose.msra.mxu0 %v977_v23 }
 0x268   :  { %2691 = vtanh.f32 %v835_v24  ;;  %v838_v28 = vadd.f32 %v3261_v18, %v837_v27  ;;  %1131 = vmatprep.mubr.bf16.mxu1 %v2804_v0  ;;  %2467 = vmatprep.subr.bf16.mxu0 %v2806_v37 }
 0x269   :  { %2693 = vtanh.f32 %v846_v26 }
 0x26a   :  { %2695 = vtanh.f32 %v838_v28 }
 0x26f   :  { %1132 = vmatmul.mubr.bf16.gmra.mrb[52].mxu1 %v978_v17  ;;  %2468 = vmatpush3.bf16.xpose.msra.mxu0 %v978_v17 }
 0x270   :  { %1141 = vmatprep.mubr.bf16.mxu1 %v2804_v0  ;;  %2469 = vmatprep.subr.bf16.mxu0 %v2806_v37 }
 0x271   :  { %v2690_v29 = vpop.eup %2689 }
 0x272   :  { %v2692_v31 = vpop.eup %2691 }
 0x273   :  { %v2694_v33 = vpop.eup %2693 }
 0x274   :  { %v2696_v34 = vpop.eup %2695  ;;  %v2443_v36 = vpop.f32.mrb[24].mxu1  ;;  %v980_v38 = vpack.c.bf16 %v2694_v33, %v2690_v29 }
 0x275   :  { %v859_v39 = vadd.f32 %v2443_v36, %v3261_v18  ;;  %v850_v40 = vpop.f32.mrb[25].mxu1  ;;  %v979_v41 = vpack.c.bf16 %v2696_v34, %v2692_v31 }
 0x276   :  { %v851_v42 = vadd.f32 %v3261_v18, %v850_v40  ;;  %v2444_v43 = vpop.f32.mrb[26].mxu1 }
 0x277   :  { %2697 = vtanh.f32 %v859_v39  ;;  %v862_v44 = vadd.f32 %v2444_v43, %v3261_v18  ;;  %v853_v45 = vpop.f32.mrb[27].mxu1  ;;  %1142 = vmatmul.mubr.bf16.gmra.mrb[56].mxu1 %v979_v41  ;;  %2470 = vmatpush3.bf16.xpose.msra.mxu0 %v979_v41 }
 0x278   :  { %2699 = vtanh.f32 %v851_v42  ;;  %v854_v47 = vadd.f32 %v3261_v18, %v853_v45  ;;  %1151 = vmatprep.mubr.bf16.mxu1 %v2804_v0  ;;  %2471 = vmatprep.subr.bf16.mxu0 %v2806_v37 }
 0x279   :  { %2701 = vtanh.f32 %v862_v44 }
 0x27a   :  { %2703 = vtanh.f32 %v854_v47 }
 0x27f   :  { %1152 = vmatmul.mubr.bf16.gmra.mrb[60].mxu1 %v980_v38  ;;  %2472 = vmatpush3.bf16.xpose.msra.mxu0 %v980_v38 }
 0x280   :  { %1161 = vmatprep.mubr.bf16.mxu1 %v2804_v0  ;;  %2473 = vmatprep.subr.bf16.mxu0 %v2806_v37 }
 0x281   :  { %v2698_v48 = vpop.eup %2697 }
 0x282   :  { %v2700_v49 = vpop.eup %2699 }
 0x283   :  { %v2702_v54 = vpop.eup %2701 }
 0x284   :  { %v2704_v55 = vpop.eup %2703  ;;  %v2447_v56 = vpop.f32.mrb[28].mxu1  ;;  %v982_v15 = vpack.c.bf16 %v2702_v54, %v2698_v48 }
 0x285   :  { %v875_v20 = vadd.f32 %v2447_v56, %v3261_v18  ;;  %v866_v22 = vpop.f32.mrb[29].mxu1  ;;  %v981_v32 = vpack.c.bf16 %v2704_v55, %v2700_v49 }
 0x286   :  { %v867_v35 = vadd.f32 %v3261_v18, %v866_v22  ;;  %v2448_v46 = vpop.f32.mrb[30].mxu1 }
 0x287   :  { %2705 = vtanh.f32 %v875_v20  ;;  %v878_v52 = vadd.f32 %v2448_v46, %v3261_v18  ;;  %v869_v53 = vpop.f32.mrb[31].mxu1  ;;  %1162 = vmatmul.mubr.bf16.gmra.mrb[64].mxu1 %v981_v32  ;;  %2474 = vmatpush3.bf16.xpose.msra.mxu0 %v981_v32 }
 0x288   :  { %2707 = vtanh.f32 %v867_v35  ;;  %v870_v57 = vadd.f32 %v3261_v18, %v869_v53  ;;  %1171 = vmatprep.mubr.bf16.mxu1 %v2804_v0  ;;  %2475 = vmatprep.subr.bf16.mxu0 %v2806_v37 }
 0x289   :  { %2709 = vtanh.f32 %v878_v52 }
 0x28a   :  { %2711 = vtanh.f32 %v870_v57 }
 0x28f   :  { %1172 = vmatmul.mubr.bf16.gmra.mrb[68].mxu1 %v982_v15  ;;  %2476 = vmatpush3.bf16.xpose.msra.mxu0 %v982_v15 }
 0x290   :  { %1181 = vmatprep.mubr.bf16.mxu1 %v2804_v0  ;;  %2477 = vmatprep.subr.bf16.mxu0 %v2806_v37 }
 0x291   :  { %v2706_v58 = vpop.eup %2705 }
 0x292   :  { %v2708_v60 = vpop.eup %2707 }
 0x293   :  { %v2710_v61 = vpop.eup %2709 }
 0x294   :  { %v2712_v62 = vpop.eup %2711  ;;  %v2451_v63 = vpop.f32.mrb[32].mxu1  ;;  %v984_v1 = vpack.c.bf16 %v2710_v61, %v2706_v58 }
 0x295   :  { %v891_v2 = vadd.f32 %v2451_v63, %v3261_v18  ;;  %v882_v3 = vpop.f32.mrb[33].mxu1  ;;  %v983_v4 = vpack.c.bf16 %v2712_v62, %v2708_v60 }
 0x296   :  { %v883_v5 = vadd.f32 %v3261_v18, %v882_v3  ;;  %v2452_v6 = vpop.f32.mrb[34].mxu1 }
 0x297   :  { %2713 = vtanh.f32 %v891_v2  ;;  %v894_v7 = vadd.f32 %v2452_v6, %v3261_v18  ;;  %v885_v8 = vpop.f32.mrb[35].mxu1  ;;  %1182 = vmatmul.mubr.bf16.gmra.mrb[72].mxu1 %v983_v4  ;;  %2478 = vmatpush3.bf16.xpose.msra.mxu0 %v983_v4 }
 0x298   :  { %2715 = vtanh.f32 %v883_v5  ;;  %v886_v9 = vadd.f32 %v3261_v18, %v885_v8  ;;  %1191 = vmatprep.mubr.bf16.mxu1 %v2804_v0  ;;  %2479 = vmatprep.subr.bf16.mxu0 %v2806_v37 }
 0x299   :  { %2717 = vtanh.f32 %v894_v7  ;;  %v3612_v7 = vld [vmem:[%s3698_s8] sm:$0x1] }
 0x29a   :  { %2719 = vtanh.f32 %v886_v9 }
 0x29f   :  { %1192 = vmatmul.mubr.bf16.gmra.mrb[76].mxu1 %v984_v1  ;;  %2480 = vmatpush3.bf16.xpose.msra.mxu0 %v984_v1  ;;  %v3348_v1 = vshrl.u32 %v53_v50, 7 }
 0x2a0   :  { %1201 = vmatprep.mubr.bf16.mxu1 %v2804_v0  ;;  %2485 = vmatprep.subr.bf16.mxu0 %v2806_v37 }
 0x2a1   :  { %v2714_v10 = vpop.eup %2713  ;;  %v3351_v2 = vadd.s32 8, %v3348_v1  ;;  %vm1363_vm7 = vcmp.lt.s32.totalorder %v3348_v1, %v3033_v51  ;;  %v3367_v50 = vadd.s32 16, %v3348_v1  ;;  %v3370_v4 = vadd.s32 24, %v3348_v1 }
 0x2a2   :  { %v2716_v11 = vpop.eup %2715  ;;  %v3385_v5 = vadd.s32 32, %v3348_v1  ;;  %v3388_v6 = vadd.s32 40, %v3348_v1  ;;  %v3404_v8 = vadd.s32 48, %v3348_v1  ;;  %v3407_v9 = vadd.s32 56, %v3348_v1 }
 0x2a3   :  { %v2718_v12 = vpop.eup %2717  ;;  %vm1364_vm8 = vcmp.lt.s32.totalorder %v3351_v2, %v3033_v51  ;;  %vm1365_vm10 = vcmp.lt.s32.totalorder %v3367_v50, %v3033_v51  ;;  %vm1366_vm11 = vcmp.lt.s32.totalorder %v3370_v4, %v3033_v51 }
 0x2a4   :  { %v2720_v14 = vpop.eup %2719  ;;  %v2455_v16 = vpop.f32.mrb[36].mxu1  ;;  %v3304_v17 = vpack.c.bf16 %v2718_v12, %v2714_v10  ;;  %vm3358_vm9 = vmpackc.low %vm1364_vm8, %vm1363_vm7  ;;  %vm1367_vm13 = vcmp.lt.s32.totalorder %v3385_v5, %v3033_v51  ;;  %vm1368_vm14 = vcmp.lt.s32.totalorder %v3388_v6, %v3033_v51  ;;  %vm1369_vm0 = vcmp.lt.s32.totalorder %v3404_v8, %v3033_v51 }
 0x2a5   :  { %v907_v19 = vadd.f32 %v2455_v16, %v3261_v18  ;;  %v898_v21 = vpop.f32.mrb[37].mxu1  ;;  %v3307_v23 = vpack.c.bf16 %v2720_v14, %v2716_v11  ;;  %vm3377_vm12 = vmpackc.low %vm1366_vm11, %vm1365_vm10  ;;  %vm1370_vm2 = vcmp.lt.s32.totalorder %v3407_v9, %v3033_v51  ;;  %v3424_v11 = vadd.s32 64, %v3348_v1 }
 0x2a6   :  { %v899_v24 = vadd.f32 %v3261_v18, %v898_v21  ;;  %v2456_v25 = vpop.f32.mrb[38].mxu1  ;;  %2482 = vmatmul.mubr.bf16.vlgmr.msra.gmra.mrb[48].mxu0 %v3302_v13  ;;  %vm3396_vm15 = vmpackc.low %vm1368_vm14, %vm1367_vm13  ;;  %v3427_v12 = vadd.s32 72, %v3348_v1  ;;  %v3442_v16 = vadd.s32 80, %v3348_v1 }
 0x2a7   :  { %2721 = vtanh.f32 %v907_v19  ;;  %v910_v26 = vadd.f32 %v2456_v25, %v3261_v18  ;;  %v901_v27 = vpop.f32.mrb[39].mxu1  ;;  %1202 = vmatmul.mubr.bf16.gmra.mrb[80].mxu1 %v3307_v23  ;;  %2501 = vmatprep.mubr.msk.bf16.mxu0 %vm3703_vm3, %v2806_v37  ;;  %vm3416_vm4 = vmpackc.low %vm1370_vm2, %vm1369_vm0  ;;  %vm1371_vm5 = vcmp.lt.s32.totalorder %v3424_v11, %v3033_v51  ;;  %v3445_v19 = vadd.s32 88, %v3348_v1 }
 0x2a8   :  { %2723 = vtanh.f32 %v899_v24  ;;  %v902_v28 = vadd.f32 %v3261_v18, %v901_v27  ;;  %1211 = vmatprep.mubr.bf16.mxu1 %v2804_v0  ;;  %2486 = vmatpush3.bf16.msk.msra.mxu0 %vm3358_vm9, %v2805_v59  ;;  %vm1372_vm6 = vcmp.lt.s32.totalorder %v3427_v12, %v3033_v51  ;;  %vm1373_vm8 = vcmp.lt.s32.totalorder %v3442_v16, %v3033_v51 }
 0x2a9   :  { %2725 = vtanh.f32 %v910_v26  ;;  %2487 = vmatprep.subr.bf16.mxu0 %v2806_v37  ;;  %vm3434_vm7 = vmpackc.low %vm1372_vm6, %vm1371_vm5  ;;  %vm1374_vm10 = vcmp.lt.s32.totalorder %v3445_v19, %v3033_v51  ;;  %v3460_v24 = vadd.s32 96, %v3348_v1  ;;  %v3463_v25 = vadd.s32 104, %v3348_v1 }
 0x2aa   :  { %2727 = vtanh.f32 %v902_v28  ;;  %vm3452_vm11 = vmpackc.low %vm1374_vm10, %vm1373_vm8  ;;  %v3718_v26 = vmov 0  ;;  %v3478_v27 = vadd.s32 112, %v3348_v1  ;;  %v3481_v28 = vadd.s32 120, %v3348_v1 }
 0x2ab   :  { %vm1375_vm13 = vcmp.lt.s32.totalorder %v3460_v24, %v3033_v51  ;;  %vm1376_vm14 = vcmp.lt.s32.totalorder %v3463_v25, %v3033_v51 }
 0x2ac   :  { %v2459_v29 = vpop.f32.mrb[40].mxu1  ;;  %2488 = vmatpush3.bf16.msk.msra.mxu0 %vm3377_vm12, %v2805_v59  ;;  %vm3470_vm0 = vmpackc.low %vm1376_vm14, %vm1375_vm13  ;;  %vm1377_vm2 = vcmp.lt.s32.totalorder %v3478_v27, %v3033_v51  ;;  %vm1378_vm5 = vcmp.lt.s32.totalorder %v3481_v28, %v3033_v51 }
 0x2ad   :  { %v923_v31 = vadd.f32 %v2459_v29, %v3261_v18  ;;  %v914_v33 = vpop.f32.mrb[41].mxu1  ;;  %2489 = vmatprep.subr.bf16.mxu0 %v2806_v37  ;;  %v3719_v26 = vsel %vm3470_vm0, 4294967295, %v3718_v26  ;;  %vm3488_vm6 = vmpackc.low %vm1378_vm5, %vm1377_vm2  ;;  %v3720_v29 = vmov 0 }
 0x2ae   :  { %v915_v34 = vadd.f32 %v3261_v18, %v914_v33  ;;  %v2460_v36 = vpop.f32.mrb[42].mxu1  ;;  %v3721_v29 = vsel %vm3488_vm6, 4294967295, %v3720_v29 }
 0x2af   :  { %2729 = vtanh.f32 %v923_v31  ;;  %v926_v38 = vadd.f32 %v2460_v36, %v3261_v18  ;;  %v917_v39 = vpop.f32.mrb[43].mxu1  ;;  %1212 = vmatmul.mubr.bf16.gmra.mrb[84].mxu1 %v3304_v17 }
 0x2b0   :  { %2731 = vtanh.f32 %v915_v34  ;;  %v918_v40 = vadd.f32 %v3261_v18, %v917_v39  ;;  %1221 = vmatprep.mubr.bf16.mxu1 %v2804_v0  ;;  %2490 = vmatpush3.bf16.msk.msra.mxu0 %vm3396_vm15, %v2805_v59 }
 0x2b1   :  { %v2722_v41 = vpop.eup %2721  ;;  %2733 = vtanh.f32 %v926_v38  ;;  %2491 = vmatprep.subr.bf16.mxu0 %v2806_v37 }
 0x2b2   :  { %v2724_v42 = vpop.eup %2723  ;;  %2735 = vtanh.f32 %v918_v40 }
 0x2b3   :  { %v2726_v43 = vpop.eup %2725 }
 0x2b4   :  { %v2728_v44 = vpop.eup %2727  ;;  %v2463_v45 = vpop.f32.mrb[44].mxu1  ;;  %v3323_v47 = vpack.c.bf16 %v2726_v43, %v2722_v41  ;;  %2492 = vmatpush3.bf16.msk.msra.mxu0 %vm3416_vm4, %v2805_v59 }
 0x2b5   :  { %v939_v48 = vadd.f32 %v2463_v45, %v3261_v18  ;;  %v930_v49 = vpop.f32.mrb[45].mxu1  ;;  %v3326_v54 = vpack.c.bf16 %v2728_v44, %v2724_v42  ;;  %2493 = vmatprep.subr.bf16.mxu0 %v2806_v37 }
 0x2b6   :  { %v931_v55 = vadd.f32 %v3261_v18, %v930_v49  ;;  %v2464_v56 = vpop.f32.mrb[46].mxu1 }
 0x2b7   :  { %2737 = vtanh.f32 %v939_v48  ;;  %v942_v15 = vadd.f32 %v2464_v56, %v3261_v18  ;;  %v933_v20 = vpop.f32.mrb[47].mxu1  ;;  %1222 = vmatmul.mubr.bf16.gmra.mrb[88].mxu1 %v3326_v54 }
 0x2b8   :  { %2739 = vtanh.f32 %v931_v55  ;;  %v934_v22 = vadd.f32 %v3261_v18, %v933_v20  ;;  %1231 = vmatprep.mubr.bf16.mxu1 %v2804_v0  ;;  %2494 = vmatpush3.bf16.msk.msra.mxu0 %vm3434_vm7, %v2805_v59 }
 0x2b9   :  { %v2730_v32 = vpop.eup %2729  ;;  %2741 = vtanh.f32 %v942_v15  ;;  %2495 = vmatprep.subr.bf16.mxu0 %v2806_v37 }
 0x2ba   :  { %v2732_v35 = vpop.eup %2731  ;;  %2743 = vtanh.f32 %v934_v22 }
 0x2bb   :  { %v2734_v46 = vpop.eup %2733 }
 0x2bc   :  { %v2736_v52 = vpop.eup %2735  ;;  %v3333_v53 = vpack.c.bf16 %v2734_v46, %v2730_v32  ;;  %2496 = vmatpush3.bf16.msk.msra.mxu0 %vm3452_vm11, %v2805_v59 }
 0x2bd   :  { %v3335_v57 = vpack.c.bf16 %v2736_v52, %v2732_v35  ;;  %2497 = vmatprep.subr.bf16.mxu0 %v2806_v37 }
 0x2bf   :  { %1232 = vmatmul.mubr.bf16.gmra.mrb[92].mxu1 %v3323_v47 }
 0x2c0   :  { %1241 = vmatprep.mubr.bf16.mxu1 %v2804_v0  ;;  %2498 = vmatpush3.bf16.msk.msra.mxu0 %vm3470_vm0, %v2805_v59 }
 0x2c1   :  { %v2738_v58 = vpop.eup %2737  ;;  %2499 = vmatprep.subr.bf16.mxu0 %v2806_v37 }
 0x2c2   :  { %v2740_v60 = vpop.eup %2739 }
 0x2c3   :  { %v2742_v61 = vpop.eup %2741 }
 0x2c4   :  { %v2744_v18 = vpop.eup %2743  ;;  %v3339_v62 = vpack.c.bf16 %v2742_v61, %v2738_v58  ;;  %2500 = vmatpush3.bf16.msk.msra.mxu0 %vm3488_vm6, %v2805_v59 }
 0x2c5   :  { %v3341_v63 = vpack.c.bf16 %v2744_v18, %v2740_v60  ;;  %2525 = vmatprep.subr.bf16.mxu0 %v2806_v37 }
 0x2c7   :  { %1242 = vmatmul.mubr.bf16.gmra.mrb[96].mxu1 %v3335_v57 }
 0x2c8   :  { %1251 = vmatprep.mubr.bf16.mxu1 %v2804_v0 }
 0x2cf   :  { %1252 = vmatmul.mubr.bf16.gmra.mrb[100].mxu1 %v3333_v53 }
 0x2d0   :  { %1261 = vmatprep.mubr.bf16.mxu1 %v2804_v0 }
 0x2d7   :  { %1262 = vmatmul.mubr.bf16.gmra.mrb[104].mxu1 %v3341_v63 }
 0x2d8   :  { %1271 = vmatprep.mubr.bf16.mxu1 %v2804_v0 }
 0x2df   :  { %1272 = vmatmul.mubr.bf16.gmra.mrb[108].mxu1 %v3339_v62 }
 0x2e0   :  { %2521 = vmatprep.mubr.msk.bf16.mxu1 %vm3703_vm3, %v2806_v37 }
 0x33a   :  { %v1123_v31 = vpop.f32.mrb[48].mxu1 }
 0x33b   :  { %1282 = vst [vmem:[#allocation8] sm:$0xff] %v1123_v31  ;;  %v1125_v33 = vpop.f32.mrb[49].mxu1 }
 0x33c   :  { %1283 = vst [vmem:[#allocation8 + $0x8] sm:$0xff] %v1125_v33  ;;  %v1127_v34 = vpop.f32.mrb[50].mxu1 }
 0x33d   :  { %1284 = vst [vmem:[#allocation8 + $0x10] sm:$0xff] %v1127_v34  ;;  %v1129_v36 = vpop.f32.mrb[51].mxu1 }
 0x33e   :  { %1285 = vst [vmem:[#allocation8 + $0x18] sm:$0xff] %v1129_v36 }
 0x342   :  { %v1133_v38 = vpop.f32.mrb[52].mxu1 }
 0x343   :  { %1286 = vst [vmem:[#allocation8 + $0x20] sm:$0xff] %v1133_v38  ;;  %v1135_v39 = vpop.f32.mrb[53].mxu1 }
 0x344   :  { %1287 = vst [vmem:[#allocation8 + $0x28] sm:$0xff] %v1135_v39  ;;  %v1137_v40 = vpop.f32.mrb[54].mxu1  ;;  %v1493_v39 = vstv %s2602_s7 }
 0x345   :  { %1288 = vst [vmem:[#allocation8 + $0x30] sm:$0xff] %v1137_v40  ;;  %v1139_v41 = vpop.f32.mrb[55].mxu1  ;;  %vm3497_vm8 = vcmp.lt.s32.totalorder %v3033_v51, %v1493_v39 }
 0x346   :  { %1289 = vst [vmem:[#allocation8 + $0x38] sm:$0xff] %v1139_v41 }
 0x34a   :  { %v1143_v42 = vpop.f32.mrb[56].mxu1 }
 0x34b   :  { %1290 = vst [vmem:[#allocation8 + $0x40] sm:$0xff] %v1143_v42  ;;  %v1145_v43 = vpop.f32.mrb[57].mxu1 }
 0x34c   :  { %1291 = vst [vmem:[#allocation8 + $0x48] sm:$0xff] %v1145_v43  ;;  %v1147_v44 = vpop.f32.mrb[58].mxu1 }
 0x34d   :  { %1292 = vst [vmem:[#allocation8 + $0x50] sm:$0xff] %v1147_v44  ;;  %v1149_v45 = vpop.f32.mrb[59].mxu1 }
 0x34e   :  { %1293 = vst [vmem:[#allocation8 + $0x58] sm:$0xff] %v1149_v45 }
 0x352   :  { %v1153_v48 = vpop.f32.mrb[60].mxu1 }
 0x353   :  { %1294 = vst [vmem:[#allocation8 + $0x60] sm:$0xff] %v1153_v48  ;;  %v1155_v49 = vpop.f32.mrb[61].mxu1 }
 0x354   :  { %1295 = vst [vmem:[#allocation8 + $0x68] sm:$0xff] %v1155_v49  ;;  %v1157_v55 = vpop.f32.mrb[62].mxu1 }
 0x355   :  { %1296 = vst [vmem:[#allocation8 + $0x70] sm:$0xff] %v1157_v55  ;;  %v1159_v56 = vpop.f32.mrb[63].mxu1 }
 0x356   :  { %1297 = vst [vmem:[#allocation8 + $0x78] sm:$0xff] %v1159_v56 }
 0x35a   :  { %v1163_v15 = vpop.f32.mrb[64].mxu1 }
 0x35b   :  { %1298 = vst [vmem:[#allocation8 + $0x80] sm:$0xff] %v1163_v15  ;;  %v1165_v20 = vpop.f32.mrb[65].mxu1 }
 0x35c   :  { %1299 = vst [vmem:[#allocation8 + $0x88] sm:$0xff] %v1165_v20  ;;  %v1167_v22 = vpop.f32.mrb[66].mxu1 }
 0x35d   :  { %1300 = vst [vmem:[#allocation8 + $0x90] sm:$0xff] %v1167_v22  ;;  %v1169_v32 = vpop.f32.mrb[67].mxu1 }
 0x35e   :  { %1301 = vst [vmem:[#allocation8 + $0x98] sm:$0xff] %v1169_v32 }
 0x362   :  { %v1173_v35 = vpop.f32.mrb[68].mxu1 }
 0x363   :  { %1302 = vst [vmem:[#allocation8 + $0xa0] sm:$0xff] %v1173_v35  ;;  %v1175_v46 = vpop.f32.mrb[69].mxu1 }
 0x364   :  { %1303 = vst [vmem:[#allocation8 + $0xa8] sm:$0xff] %v1175_v46  ;;  %v1177_v52 = vpop.f32.mrb[70].mxu1 }
 0x365   :  { %1304 = vst [vmem:[#allocation8 + $0xb0] sm:$0xff] %v1177_v52  ;;  %v1179_v58 = vpop.f32.mrb[71].mxu1 }
 0x366   :  { %1305 = vst [vmem:[#allocation8 + $0xb8] sm:$0xff] %v1179_v58 }
 0x36a   :  { %v1183_v60 = vpop.f32.mrb[72].mxu1 }
 0x36b   :  { %1306 = vst [vmem:[#allocation8 + $0xc0] sm:$0xff] %v1183_v60  ;;  %v1185_v61 = vpop.f32.mrb[73].mxu1 }
 0x36c   :  { %1307 = vst [vmem:[#allocation8 + $0xc8] sm:$0xff] %v1185_v61  ;;  %v1187_v18 = vpop.f32.mrb[74].mxu1 }
 0x36d   :  { %1308 = vst [vmem:[#allocation8 + $0xd0] sm:$0xff] %v1187_v18  ;;  %v1189_v31 = vpop.f32.mrb[75].mxu1 }
 0x36e   :  { %1309 = vst [vmem:[#allocation8 + $0xd8] sm:$0xff] %v1189_v31 }
 0x372   :  { %v1193_v33 = vpop.f32.mrb[76].mxu1 }
 0x373   :  { %1310 = vst [vmem:[#allocation8 + $0xe0] sm:$0xff] %v1193_v33  ;;  %v1195_v34 = vpop.f32.mrb[77].mxu1 }
 0x374   :  { %1311 = vst [vmem:[#allocation8 + $0xe8] sm:$0xff] %v1195_v34  ;;  %v1197_v36 = vpop.f32.mrb[78].mxu1 }
 0x375   :  { %1312 = vst [vmem:[#allocation8 + $0xf0] sm:$0xff] %v1197_v36  ;;  %v1199_v38 = vpop.f32.mrb[79].mxu1 }
 0x376   :  { %1313 = vst [vmem:[#allocation8 + $0xf8] sm:$0xff] %v1199_v38 }
 0x379   :  { %v3501_v41 = vpop.f32.mrb[48].mxu0 }
 0x37a   :  { %v1495_v42 = vsel %vm3497_vm8, 0.0, %v3501_v41  ;;  %v1203_v43 = vpop.f32.mrb[80].mxu1  ;;  %v2483_v44 = vpop.f32.mrb[49].mxu0 }
 0x37b   :  { %vm1496_vm10 = vcmp.ne.f32.partialorder %v1495_v42, 0.0  ;;  %1314 = vst [vmem:[#allocation8 + $0x100] sm:$0xff] %v1203_v43  ;;  %v1205_v45 = vpop.f32.mrb[81].mxu1  ;;  %v1460_v48 = vpop.f32.mrb[50].mxu0 }
 0x37c   :  { %vm2130_vm13 = vmpackc.low %vm1496_vm10, %vm1496_vm10  ;;  %1315 = vst [vmem:[#allocation8 + $0x108] sm:$0xff] %v1205_v45  ;;  %v1207_v49 = vpop.f32.mrb[82].mxu1  ;;  %v2484_v55 = vpop.f32.mrb[51].mxu0 }
 0x37d   :  { %1316 = vst [vmem:[#allocation8 + $0x110] sm:$0xff] %v1207_v49  ;;  %v1209_v56 = vpop.f32.mrb[83].mxu1  ;;  %2502 = vmatmul.mubr.msk.bf16.vlgmr.msra.gmra.mrb[52].mxu0 %vm2130_vm13, %v2805_v59  ;;  %v1544_v55 = vsub.s32 0, %v3348_v1 }
 0x37e   :  { %1317 = vst [vmem:[#allocation8 + $0x118] sm:$0xff] %v1209_v56  ;;  %2526 = vmatpush3.bf16.xpose.msra.mxu0 %v3307_v23  ;;  %2541 = vmatprep.mubr.msk.bf16.mxu0 %vm3703_vm3, %v2806_v37 }
 0x37f   :  { %2527 = vmatprep.subr.bf16.mxu0 %v2806_v37 }
 0x382   :  { %v1213_v15 = vpop.f32.mrb[84].mxu1 }
 0x383   :  { %1318 = vst [vmem:[#allocation8 + $0x120] sm:$0xff] %v1213_v15  ;;  %v1215_v20 = vpop.f32.mrb[85].mxu1 }
 0x384   :  { %1319 = vst [vmem:[#allocation8 + $0x128] sm:$0xff] %v1215_v20  ;;  %v1217_v22 = vpop.f32.mrb[86].mxu1 }
 0x385   :  { %1320 = vst [vmem:[#allocation8 + $0x130] sm:$0xff] %v1217_v22  ;;  %v1219_v32 = vpop.f32.mrb[87].mxu1 }
 0x386   :  { %1321 = vst [vmem:[#allocation8 + $0x138] sm:$0xff] %v1219_v32  ;;  %2528 = vmatpush3.bf16.xpose.msra.mxu0 %v3304_v17 }
 0x387   :  { %2529 = vmatprep.subr.bf16.mxu0 %v2806_v37 }
 0x38a   :  { %v1223_v35 = vpop.f32.mrb[88].mxu1 }
 0x38b   :  { %1322 = vst [vmem:[#allocation8 + $0x140] sm:$0xff] %v1223_v35  ;;  %v1225_v23 = vpop.f32.mrb[89].mxu1 }
 0x38c   :  { %1323 = vst [vmem:[#allocation8 + $0x148] sm:$0xff] %v1225_v23  ;;  %v1227_v46 = vpop.f32.mrb[90].mxu1 }
 0x38d   :  { %1324 = vst [vmem:[#allocation8 + $0x150] sm:$0xff] %v1227_v46  ;;  %v1229_v52 = vpop.f32.mrb[91].mxu1 }
 0x38e   :  { %1325 = vst [vmem:[#allocation8 + $0x158] sm:$0xff] %v1229_v52  ;;  %2530 = vmatpush3.bf16.xpose.msra.mxu0 %v3326_v54 }
 0x38f   :  { %2531 = vmatprep.subr.bf16.mxu0 %v2806_v37 }
 0x392   :  { %v1233_v58 = vpop.f32.mrb[92].mxu1 }
 0x393   :  { %1326 = vst [vmem:[#allocation8 + $0x160] sm:$0xff] %v1233_v58  ;;  %v1235_v60 = vpop.f32.mrb[93].mxu1 }
 0x394   :  { %1327 = vst [vmem:[#allocation8 + $0x168] sm:$0xff] %v1235_v60  ;;  %v1237_v61 = vpop.f32.mrb[94].mxu1 }
 0x395   :  { %1328 = vst [vmem:[#allocation8 + $0x170] sm:$0xff] %v1237_v61  ;;  %v1239_v17 = vpop.f32.mrb[95].mxu1 }
 0x396   :  { %1329 = vst [vmem:[#allocation8 + $0x178] sm:$0xff] %v1239_v17  ;;  %2532 = vmatpush3.bf16.xpose.msra.mxu0 %v3323_v47 }
 0x397   :  { %2533 = vmatprep.subr.bf16.mxu0 %v2806_v37 }
 0x39a   :  { %v1243_v18 = vpop.f32.mrb[96].mxu1 }
 0x39b   :  { %1330 = vst [vmem:[#allocation8 + $0x180] sm:$0xff] %v1243_v18  ;;  %v1245_v31 = vpop.f32.mrb[97].mxu1 }
 0x39c   :  { %1331 = vst [vmem:[#allocation8 + $0x188] sm:$0xff] %v1245_v31  ;;  %v1247_v33 = vpop.f32.mrb[98].mxu1 }
 0x39d   :  { %1332 = vst [vmem:[#allocation8 + $0x190] sm:$0xff] %v1247_v33  ;;  %v1249_v54 = vpop.f32.mrb[99].mxu1 }
 0x39e   :  { %1333 = vst [vmem:[#allocation8 + $0x198] sm:$0xff] %v1249_v54  ;;  %2534 = vmatpush3.bf16.xpose.msra.mxu0 %v3335_v57 }
 0x39f   :  { %2535 = vmatprep.subr.bf16.mxu0 %v2806_v37 }
 0x3a2   :  { %v1253_v34 = vpop.f32.mrb[100].mxu1 }
 0x3a3   :  { %1334 = vst [vmem:[#allocation8 + $0x1a0] sm:$0xff] %v1253_v34  ;;  %v1255_v36 = vpop.f32.mrb[101].mxu1 }
 0x3a4   :  { %1335 = vst [vmem:[#allocation8 + $0x1a8] sm:$0xff] %v1255_v36  ;;  %v1257_v38 = vpop.f32.mrb[102].mxu1 }
 0x3a5   :  { %1336 = vst [vmem:[#allocation8 + $0x1b0] sm:$0xff] %v1257_v38  ;;  %v1259_v47 = vpop.f32.mrb[103].mxu1 }
 0x3a6   :  { %1337 = vst [vmem:[#allocation8 + $0x1b8] sm:$0xff] %v1259_v47  ;;  %2536 = vmatpush3.bf16.xpose.msra.mxu0 %v3333_v53 }
 0x3a7   :  { %2537 = vmatprep.subr.bf16.mxu0 %v2806_v37 }
 0x3aa   :  { %v1263_v39 = vpop.f32.mrb[104].mxu1 }
 0x3ab   :  { %1338 = vst [vmem:[#allocation8 + $0x1c0] sm:$0xff] %v1263_v39  ;;  %v1265_v42 = vpop.f32.mrb[105].mxu1 }
 0x3ac   :  { %1339 = vst [vmem:[#allocation8 + $0x1c8] sm:$0xff] %v1265_v42  ;;  %v1267_v43 = vpop.f32.mrb[106].mxu1 }
 0x3ad   :  { %1340 = vst [vmem:[#allocation8 + $0x1d0] sm:$0xff] %v1267_v43  ;;  %v1269_v57 = vpop.f32.mrb[107].mxu1 }
 0x3ae   :  { %1341 = vst [vmem:[#allocation8 + $0x1d8] sm:$0xff] %v1269_v57  ;;  %2538 = vmatpush3.bf16.xpose.msra.mxu0 %v3341_v63 }
 0x3af   :  { %2539 = vmatprep.subr.bf16.mxu0 %v2806_v37 }
 0x3b2   :  { %v1273_v44 = vpop.f32.mrb[108].mxu1 }
 0x3b3   :  { %1342 = vst [vmem:[#allocation8 + $0x1e0] sm:$0xff] %v1273_v44  ;;  %v1275_v45 = vpop.f32.mrb[109].mxu1 }
 0x3b4   :  { %1343 = vst [vmem:[#allocation8 + $0x1e8] sm:$0xff] %v1275_v45  ;;  %v1277_v48 = vpop.f32.mrb[110].mxu1 }
 0x3b5   :  { %1344 = vst [vmem:[#allocation8 + $0x1f0] sm:$0xff] %v1277_v48  ;;  %v1279_v53 = vpop.f32.mrb[111].mxu1 }
 0x3b6   :  { %1345 = vst [vmem:[#allocation8 + $0x1f8] sm:$0xff] %v1279_v53  ;;  %2540 = vmatpush3.bf16.xpose.msra.mxu0 %v3339_v62  ;;  %v2169_v62 = vld [vmem:[%s3691_s1 + $0x1] sm:$0x1] }
 0x3b7   :  { %2565 = vmatprep.subr.bf16.mxu0 %v2806_v37 }
 0x3bd   :  { %2542 = vmatmul.mubr.bf16.vlgmr.msra.gmra.mrb[56].mxu0 %v3302_v13  ;;  %v2167_v13 = vpack.c.bf16 %v3501_v41, %v3501_v41 }
 0x3be   :  { %2581 = vmatprep.mubr.msk.bf16.mxu0 %vm3703_vm3, %v2806_v37 }
 0x450   :  { %v1534_v63 = vpop.f32.mrb[52].mxu0 }
 0x451   :  { %v2603_v49 = vtrunc.f32 %v1534_v63  ;;  %v2503_v56 = vpop.f32.mrb[53].mxu0 }
 0x452   :  { %v1537_v15 = vpop.f32.mrb[54].mxu0 }
 0x453   :  { %v2604_v20 = vcvt.f32.s32 %v2603_v49  ;;  %v2504_v22 = vpop.f32.mrb[55].mxu0 }
 0x455   :  { %v1545_v32 = vrot.slane %v2604_v20, %v1544_v55 }
 0x457   :  { %vm1546_vm14 = vcmp.eq.s32.totalorder %v3348_v1, %v1545_v32  ;;  %vm1547_vm2 = vcmp.eq.s32.totalorder %v3351_v2, %v1545_v32  ;;  %vm1548_vm10 = vcmp.eq.s32.totalorder %v3367_v50, %v1545_v32  ;;  %vm1549_vm13 = vcmp.eq.s32.totalorder %v3370_v4, %v1545_v32 }
 0x458   :  { %vm2148_vm5 = vmpackc.low %vm1547_vm2, %vm1546_vm14  ;;  %vm1550_vm3 = vcmp.eq.s32.totalorder %v3385_v5, %v1545_v32  ;;  %vm1551_vm6 = vcmp.eq.s32.totalorder %v3388_v6, %v1545_v32  ;;  %vm1552_vm14 = vcmp.eq.s32.totalorder %v3404_v8, %v1545_v32  ;;  %vm1553_vm2 = vcmp.eq.s32.totalorder %v3407_v9, %v1545_v32 }
 0x459   :  { %2506 = vmatpush3.bf16.xpose.msk.msra.mxu1 %vm2148_vm5, %v2805_v59  ;;  %vm2150_vm1 = vmpackc.low %vm1549_vm13, %vm1548_vm10  ;;  %vm1555_vm10 = vcmp.eq.s32.totalorder %v3427_v12, %v1545_v32 }
 0x45a   :  { %2507 = vmatprep.subr.bf16.mxu1 %v2806_v37  ;;  %vm2152_vm0 = vmpackc.low %vm1551_vm6, %vm1550_vm3  ;;  %vm1556_vm3 = vcmp.eq.s32.totalorder %v3442_v16, %v1545_v32 }
 0x45b   :  { %vm2154_vm5 = vmpackc.low %vm1553_vm2, %vm1552_vm14  ;;  %vm1558_vm14 = vcmp.eq.s32.totalorder %v3460_v24, %v1545_v32  ;;  %vm1559_vm2 = vcmp.eq.s32.totalorder %v3463_v25, %v1545_v32 }
 0x461   :  { %2508 = vmatpush3.bf16.xpose.msk.msra.mxu1 %vm2150_vm1, %v2805_v59  ;;  %vm1554_vm1 = vcmp.eq.s32.totalorder %v3424_v11, %v1545_v32 }
 0x462   :  { %2509 = vmatprep.subr.bf16.mxu1 %v2806_v37  ;;  %vm2156_vm13 = vmpackc.low %vm1555_vm10, %vm1554_vm1  ;;  %vm1560_vm1 = vcmp.eq.s32.totalorder %v3478_v27, %v1545_v32  ;;  %vm1561_vm10 = vcmp.eq.s32.totalorder %v3481_v28, %v1545_v32 }
 0x469   :  { %2510 = vmatpush3.bf16.xpose.msk.msra.mxu1 %vm2152_vm0, %v2805_v59  ;;  %vm1557_vm0 = vcmp.eq.s32.totalorder %v3445_v19, %v1545_v32 }
 0x46a   :  { %2511 = vmatprep.subr.bf16.mxu1 %v2806_v37  ;;  %vm2158_vm6 = vmpackc.low %vm1557_vm0, %vm1556_vm3 }
 0x46b   :  { %vm2164_vm3 = vmneg %vm3497_vm8 }
 0x46c   :  { %vm2166_vm0 = vmpackc.low %vm2164_vm3, %vm2164_vm3 }
 0x471   :  { %2512 = vmatpush3.bf16.xpose.msk.msra.mxu1 %vm2154_vm5, %v2805_v59  ;;  %vm2160_vm5 = vmpackc.low %vm1559_vm2, %vm1558_vm14 }
 0x472   :  { %2513 = vmatprep.subr.bf16.mxu1 %v2806_v37 }
 0x479   :  { %2514 = vmatpush3.bf16.xpose.msk.msra.mxu1 %vm2156_vm13, %v2805_v59  ;;  %vm2162_vm13 = vmpackc.low %vm1561_vm10, %vm1560_vm1 }
 0x47a   :  { %2515 = vmatprep.subr.bf16.mxu1 %v2806_v37 }
 0x481   :  { %2516 = vmatpush3.bf16.xpose.msk.msra.mxu1 %vm2158_vm6, %v2805_v59  ;;  %vm3724_vm6 = vmmov 0  }
 0x482   :  { %2517 = vmatprep.subr.bf16.mxu1 %v2806_v37 }
 0x489   :  { %2518 = vmatpush3.bf16.xpose.msk.msra.mxu1 %vm2160_vm5, %v2805_v59 }
 0x48a   :  { %2519 = vmatprep.subr.bf16.mxu1 %v2806_v37 }
 0x490   :  { %v3619_v38 = vpop.f32.mrb[56].mxu0 }
 0x491   :  { %2520 = vmatpush3.bf16.xpose.msk.msra.mxu1 %vm2162_vm13, %v2805_v59  ;;  %v2543_v47 = vpop.f32.mrb[57].mxu0 }
 0x492   :  { %2545 = vmatprep.subr.bf16.mxu1 %v2806_v37  ;;  %v1702_v39 = vpop.f32.mrb[58].mxu0 }
 0x493   :  { %v2544_v42 = vpop.f32.mrb[59].mxu0 }
 0x498   :  { %2522 = vmatmul.mubr.msk.bf16.vlgmr.msra.gmra.mrb[112].mxu1 %vm2166_vm0, %v2167_v13 }
 0x499   :  { %2546 = vmatpush3.bf16.msk.msra.mxu1 %vm3358_vm9, %v2805_v59  ;;  %2561 = vmatprep.mubr.msk.bf16.mxu1 %vm3724_vm6, %v2806_v37  ;;  %vm3725_vm9 = vnez %v3719_v26 }
 0x49a   :  { %2547 = vmatprep.subr.bf16.mxu1 %v2806_v37 }
 0x49d   :  { %2548 = vmatpush3.bf16.msk.msra.mxu1 %vm3377_vm12, %v2805_v59  ;;  %vm3726_vm12 = vnez %v3721_v29 }
 0x49e   :  { %2549 = vmatprep.subr.bf16.mxu1 %v2806_v37 }
 0x4a1   :  { %2550 = vmatpush3.bf16.msk.msra.mxu1 %vm3396_vm15, %v2805_v59  ;;  %vm1707_vm15 = vcmp.eq.s32.totalorder %v2169_v62, %v1464_v30 }
 0x4a2   :  { %2551 = vmatprep.subr.bf16.mxu1 %v2806_v37  ;;  %v1708_v3 = vsel %vm1707_vm15, %v3033_v51, 128 }
 0x4a5   :  { %2552 = vmatpush3.bf16.msk.msra.mxu1 %vm3416_vm4, %v2805_v59  ;;  %vm3727_vm4 = vcmask 1040384  }
 0x4a6   :  { %2553 = vmatprep.subr.bf16.mxu1 %v2806_v37  ;;  %v1709_v0 = vsel %vm3727_vm4, %v1708_v3, 2147483647 }
 0x4a7   :  { %v1711_v14 = vshra.s32 %v1709_v0, 16  ;;  %v1710_v35 = vand.u32 65535, %v1709_v0 }
 0x4a9   :  { %2554 = vmatpush3.bf16.msk.msra.mxu1 %vm3434_vm7, %v2805_v59  ;;  %vm3728_vm7 = vmmov %vm3727_vm4  ;;  %v1713_v30 = vcvt.s32.f32 %v1711_v14  ;;  %v1712_v52 = vcvt.s32.f32 %v1710_v35 }
 0x4aa   :  { %2555 = vmatprep.subr.bf16.mxu1 %v2806_v37 }
 0x4ad   :  { %2556 = vmatpush3.bf16.msk.msra.mxu1 %vm3452_vm11, %v2805_v59 }
 0x4ae   :  { %2557 = vmatprep.subr.bf16.mxu1 %v2806_v37 }
 0x4b1   :  { %2558 = vmatpush3.bf16.msk.msra.mxu1 %vm3725_vm9, %v2805_v59 }
 0x4b2   :  { %2559 = vmatprep.subr.bf16.mxu1 %v2806_v37 }
 0x4b5   :  { %2560 = vmatpush3.bf16.msk.msra.mxu1 %vm3726_vm12, %v2805_v59 }
 0x56b   :  { %v1636_v10 = vpop.f32.mrb[112].mxu1 }
 0x56c   :  { %v1642_v21 = vmul.f32 %v1636_v10, %v3612_v7  ;;  %v2523_v26 = vpop.f32.mrb[113].mxu1 }
 0x56d   :  { %v1639_v29 = vpop.f32.mrb[114].mxu1 }
 0x56e   :  { %v2524_v40 = vpop.f32.mrb[115].mxu1  ;;  %v1643_v41 = vsel %vm3728_vm7, %v1642_v21, 0.0 }
 0x56f   :  { %1644 = vadd.xlane.f32.xlu0 %v1643_v41 }
 0x573   :  { %1714 = vmin.xlane.f32.xlu0 %v1713_v30 }
 0x5fc   :  { %v1645_v23 = vpop.xlane.xlu0 %1644 }
 0x5fd   :  { %v1646_v46 = vrot.slane %v1645_v23, 4 }
 0x5ff   :  { %v1647_v58 = vadd.f32 %v1646_v46, %v1645_v23 }
 0x600   :  { %v1715_v60 = vpop.xlane.xlu0 %1714 }
 0x601   :  { %v1648_v61 = vrot.slane %v1647_v58, 2  ;;  %vm1716_vm11 = vcmp.eq.f32.partialorder %v1713_v30, %v1715_v60  ;;  %v1721_v44 = vcvt.f32.s32 %v1715_v60 }
 0x602   :  { %v1717_v17 = vsel %vm1716_vm11, %v1712_v52, inf }
 0x603   :  { %1718 = vmin.xlane.f32.xlu1 %v1717_v17  ;;  %v1649_v18 = vadd.f32 %v1648_v61, %v1647_v58  ;;  %v1722_v48 = vshll.u32 %v1721_v44, 16 }
 0x605   :  { %v1650_v31 = vrot.slane %v1649_v18, 1 }
 0x607   :  { %v1651_v33 = vadd.f32 %v1650_v31, %v1649_v18 }
 0x609   :  { %2605 = vpush %v1651_v33 }
 0x63a   :  { %s2606_s0 = spop %2605 }
 0x63b   :  { %s1653_s27 = sadd.f32 %s2606_s0, %s3699_s9 }
 0x63d   :  { %s1654_s28 = sxor.u32 2147483648, %s1653_s27 }
 0x63e   :  { %v1655_v54 = vstv %s1654_s28 }
 0x63f   :  { %v1656_v34 = vmul.f32 1.442695, %v1655_v54 }
 0x641   :  { %2745 = vpow2.f32 %v1656_v34 }
 0x64b   :  { %v2746_v36 = vpop.eup %2745 }
 0x64c   :  { %2607 = vpush %v2746_v36 }
 0x67d   :  { %s2608_s29 = spop %2607 }
 0x67e   :  { %s1659_s30 = sadd.f32 1.0, %s2608_s29 }
 0x680   :  { %v1660_v43 = vstv %s1659_s30 }
 0x681   :  { %2747 = vrcp.f32 %v1660_v43 }
 0x68b   :  { %v2748_v57 = vpop.eup %2747 }
 0x68c   :  { %2609 = vpush %v2748_v57 }
 0x690   :  { %v1719_v45 = vpop.xlane.xlu1 %1718 }
 0x691   :  { %v1720_v53 = vcvt.f32.s32 %v1719_v45 }
 0x693   :  { %v1723_v63 = vadd.s32 %v1722_v48, %v1720_v53 }
 0x695   :  { %v1724_v49 = vrot.slane %v1723_v63, 4 }
 0x697   :  { %vm1725_vm8 = vcmp.lt.s32.totalorder %v1723_v63, %v1724_v49 }
 0x698   :  { %v1726_v56 = vsel %vm1725_vm8, %v1723_v63, %v1724_v49 }
 0x699   :  { %v1727_v15 = vrot.slane %v1726_v56, 2 }
 0x69b   :  { %vm1728_vm14 = vcmp.lt.s32.totalorder %v1726_v56, %v1727_v15 }
 0x69c   :  { %v1729_v20 = vsel %vm1728_vm14, %v1726_v56, %v1727_v15 }
 0x69d   :  { %v1730_v22 = vrot.slane %v1729_v20, 1 }
 0x69f   :  { %vm1731_vm2 = vcmp.lt.s32.totalorder %v1729_v20, %v1730_v22 }
 0x6a0   :  { %v1732_v32 = vsel %vm1731_vm2, %v1729_v20, %v1730_v22 }
 0x6a1   :  { %2611 = vpush %v1732_v32 }
 0x6bd   :  { %s2610_s12 = spop %2609 }
 0x6be   :  { %v1663_v13 = vstv %s2610_s12 }
 0x6bf   :  { %1664 = vst [vmem:[%s3701_s11] sm:$0x1] %v1663_v13 }
 0x6d2   :  { %s2612_s14 = spop %2611 }
 0x6d3   :  { %v1734_v62 = vstv %s2612_s14 }
 0x6d4   :  { %vm3625_vm5 = vcmp.lt.s32.totalorder %v3033_v51, %v1734_v62 }
 0x6d5   :  { %v1736_v0 = vsel %vm3625_vm5, 0.0, %v3619_v38 }
 0x6d6   :  { %vm1737_vm1 = vcmp.ne.f32.partialorder %v1736_v0, 0.0 }
 0x6d7   :  { %vm2187_vm10 = vmpackc.low %vm1737_vm1, %vm1737_vm1 }
 0x6d8   :  { %2562 = vmatmul.mubr.msk.bf16.vlgmr.msra.gmra.mrb[116].mxu1 %vm2187_vm10, %v2805_v59 }
 0x7ab   :  { %v1775_v10 = vpop.f32.mrb[116].mxu1 }
 0x7ac   :  { %v2613_v14 = vtrunc.f32 %v1775_v10  ;;  %v2563_v21 = vpop.f32.mrb[117].mxu1 }
 0x7ad   :  { %v1778_v26 = vpop.f32.mrb[118].mxu1 }
 0x7ae   :  { %v2614_v29 = vcvt.f32.s32 %v2613_v14  ;;  %v2564_v40 = vpop.f32.mrb[119].mxu1 }
 0x7b0   :  { %v1786_v51 = vrot.slane %v2614_v29, %v1544_v55 }
 0x7b2   :  { %vm1787_vm13 = vcmp.eq.s32.totalorder %v3348_v1, %v1786_v51  ;;  %vm1788_vm3 = vcmp.eq.s32.totalorder %v3351_v2, %v1786_v51  ;;  %vm1789_vm6 = vcmp.eq.s32.totalorder %v3367_v50, %v1786_v51  ;;  %vm1790_vm9 = vcmp.eq.s32.totalorder %v3370_v4, %v1786_v51 }
 0x7b3   :  { %vm2205_vm0 = vmpackc.low %vm1788_vm3, %vm1787_vm13  ;;  %vm1791_vm15 = vcmp.eq.s32.totalorder %v3385_v5, %v1786_v51  ;;  %vm1792_vm4 = vcmp.eq.s32.totalorder %v3388_v6, %v1786_v51  ;;  %vm1793_vm11 = vcmp.eq.s32.totalorder %v3404_v8, %v1786_v51  ;;  %vm1794_vm8 = vcmp.eq.s32.totalorder %v3407_v9, %v1786_v51 }
 0x7b4   :  { %2566 = vmatpush3.bf16.xpose.msk.msra.mxu0 %vm2205_vm0, %v2805_v59  ;;  %vm2207_vm12 = vmpackc.low %vm1790_vm9, %vm1789_vm6  ;;  %vm1795_vm2 = vcmp.eq.s32.totalorder %v3424_v11, %v1786_v51  ;;  %vm1796_vm1 = vcmp.eq.s32.totalorder %v3427_v12, %v1786_v51  ;;  %vm1797_vm13 = vcmp.eq.s32.totalorder %v3442_v16, %v1786_v51  ;;  %vm1798_vm3 = vcmp.eq.s32.totalorder %v3445_v19, %v1786_v51 }
 0x7b5   :  { %2567 = vmatprep.subr.bf16.mxu0 %v2806_v37  ;;  %vm2209_vm7 = vmpackc.low %vm1792_vm4, %vm1791_vm15  ;;  %vm1799_vm6 = vcmp.eq.s32.totalorder %v3460_v24, %v1786_v51  ;;  %vm1800_vm9 = vcmp.eq.s32.totalorder %v3463_v25, %v1786_v51  ;;  %vm1801_vm15 = vcmp.eq.s32.totalorder %v3478_v27, %v1786_v51  ;;  %vm1802_vm4 = vcmp.eq.s32.totalorder %v3481_v28, %v1786_v51 }
 0x7b6   :  { %vm2211_vm14 = vmpackc.low %vm1794_vm8, %vm1793_vm11  ;;  %v2224_v1 = vpack.c.bf16 %v3619_v38, %v3619_v38 }
 0x7b7   :  { %vm2213_vm10 = vmpackc.low %vm1796_vm1, %vm1795_vm2 }
 0x7b8   :  { %vm2215_vm0 = vmpackc.low %vm1798_vm3, %vm1797_vm13 }
 0x7b9   :  { %vm2221_vm11 = vmneg %vm3625_vm5 }
 0x7ba   :  { %vm2223_vm8 = vmpackc.low %vm2221_vm11, %vm2221_vm11 }
 0x7bc   :  { %2568 = vmatpush3.bf16.xpose.msk.msra.mxu0 %vm2207_vm12, %v2805_v59  ;;  %vm2217_vm12 = vmpackc.low %vm1800_vm9, %vm1799_vm6 }
 0x7bd   :  { %2569 = vmatprep.subr.bf16.mxu0 %v2806_v37 }
 0x7c4   :  { %2570 = vmatpush3.bf16.xpose.msk.msra.mxu0 %vm2209_vm7, %v2805_v59  ;;  %vm2219_vm7 = vmpackc.low %vm1802_vm4, %vm1801_vm15 }
 0x7c5   :  { %2571 = vmatprep.subr.bf16.mxu0 %v2806_v37 }
 0x7cc   :  { %2572 = vmatpush3.bf16.xpose.msk.msra.mxu0 %vm2211_vm14, %v2805_v59  ;;  %vm3731_vm14 = vcmask 1040384  }
 0x7cd   :  { %2573 = vmatprep.subr.bf16.mxu0 %v2806_v37 }
 0x7d4   :  { %2574 = vmatpush3.bf16.xpose.msk.msra.mxu0 %vm2213_vm10, %v2805_v59 }
 0x7d5   :  { %2575 = vmatprep.subr.bf16.mxu0 %v2806_v37 }
 0x7dc   :  { %2576 = vmatpush3.bf16.xpose.msk.msra.mxu0 %vm2215_vm0, %v2805_v59 }
 0x7dd   :  { %2577 = vmatprep.subr.bf16.mxu0 %v2806_v37 }
 0x7e4   :  { %2578 = vmatpush3.bf16.xpose.msk.msra.mxu0 %vm2217_vm12, %v2805_v59 }
 0x7e5   :  { %2579 = vmatprep.subr.bf16.mxu0 %v2806_v37 }
 0x7ec   :  { %2580 = vmatpush3.bf16.xpose.msk.msra.mxu0 %vm2219_vm7, %v2805_v59 }
 0x7f3   :  { %2582 = vmatmul.mubr.msk.bf16.vlgmr.msra.gmra.mrb[60].mxu0 %vm2223_vm8, %v2224_v1 }
 0x8c6   :  { %v1877_v2 = vpop.f32.mrb[60].mxu0 }
 0x8c7   :  { %v1883_v50 = vmul.f32 %v1877_v2, %v3612_v7  ;;  %v2583_v4 = vpop.f32.mrb[61].mxu0 }
 0x8c8   :  { %v1880_v37 = vpop.f32.mrb[62].mxu0 }
 0x8c9   :  { %v2584_v5 = vpop.f32.mrb[63].mxu0  ;;  %v1884_v6 = vsel %vm3731_vm14, %v1883_v50, 0.0 }
 0x8ca   :  { %1885 = vadd.xlane.f32.xlu0 %v1884_v6 }
 0x957   :  { %v1886_v8 = vpop.xlane.xlu0 %1885 }
 0x958   :  { %v1887_v9 = vrot.slane %v1886_v8, 4 }
 0x95a   :  { %v1888_v59 = vadd.f32 %v1887_v9, %v1886_v8 }
 0x95c   :  { %v1889_v11 = vrot.slane %v1888_v59, 2 }
 0x95e   :  { %v1890_v12 = vadd.f32 %v1889_v11, %v1888_v59 }
 0x960   :  { %v1891_v16 = vrot.slane %v1890_v12, 1 }
 0x962   :  { %v1892_v19 = vadd.f32 %v1891_v16, %v1890_v12 }
 0x964   :  { %2615 = vpush %v1892_v19 }
 0x995   :  { %s2616_s15 = spop %2615 }
 0x996   :  { %s1894_s4 = sadd.f32 %s2616_s15, %s3699_s9 }
 0x998   :  { %s1895_s18 = sxor.u32 2147483648, %s1894_s4 }
 0x999   :  { %v1896_v24 = vstv %s1895_s18 }
 0x99a   :  { %v1897_v25 = vmul.f32 1.442695, %v1896_v24 }
 0x99c   :  { %2749 = vpow2.f32 %v1897_v25 }
 0x99d   :  { %2786 = shalt.err (!%p2783_p12)
}
 0x99e   :  { %s2787_s7 = scalar_lea.hbm %s3700_s10, 8192 }
 0x99f   :  { %p2788_p13 = scmp.ne.s32.totalorder %s3700_s10, %s2787_s7  ;;  %p2791_p0 = scmp.lt.u32.totalorder %s2787_s7, %s3700_s10 }
 0x9a1   :  { %p2793_p1 = pnand %p2791_p0, %p2788_p13 }
 0x9a3   :  { %2796 = shalt.err (!%p2793_p1)
}
 0x9a4   :  { %s2809_s25 = smov 256   ;;  %s2810_s2 = smov 16  }
 0x9a5   :  { %1918 = dma.vmem_to_hbm [thread:$0]  %s1913_s6, 8192, %s3700_s10, [#allocation7], %s2809_s25, %s2809_s25, %s2810_s2  }
 0x9a6   :  { %v2750_v27 = vpop.eup %2749 }
 0x9a7   :  { %2617 = vpush %v2750_v27 }
 0x9d8   :  { %s2618_s1 = spop %2617 }
 0x9d9   :  { %s1900_s8 = sadd.f32 1.0, %s2618_s1 }
 0x9db   :  { %v1901_v28 = vstv %s1900_s8 }
 0x9dc   :  { %2751 = vrcp.f32 %v1901_v28 }
 0x9e6   :  { %v2752_v55 = vpop.eup %2751 }
 0x9e7   :  { %2619 = vpush %v2752_v55 }
 0xa18   :  { %s2620_s27 = spop %2619 }
 0xa19   :  { %v1904_v7 = vstv %s2620_s27 }
 0xa1a   :  { %2226 = vst [vmem:[%s3701_s11 + $0x1] sm:$0x1] %v1904_v7 }
 0xa1b   :  { %2799 = dma.done.wait [#allocation7], 8192  }
 0xa1c   :  { %2800 = vsyncadd [#allocation7], 4294959104 }
 0xa1d   :  { %1926 = vsyncpa [#allocation6], 1 }
 0xa1e   :  { %1927 = vsyncpa [#allocation7], 1 }

</bundles_post_ra>
